<compile_context>
chip_gen: v7x
topology: tpu7x:2x2x1
jax: 0.10.0
libtpu: 0.0.40
codegen_flags: <defaults>
</compile_context>

<pallas_src>
import jax
import jax.numpy as jnp
from jax.experimental import pallas as pl
from jax.experimental.pallas import tpu as pltpu


# ----------------------------------------------------------------------------
# Pallas kernel: embeddings -> explicit + implicit components -> output linear
# -> sigmoid, all on one batch tile.
# ----------------------------------------------------------------------------
def xin_kernel(nx_ref, cate_ref, cati_ref,
               a0e_ref, w0c_ref, w1_ref, b1_ref, w2_ref, b2_ref,
               a1i_ref, v1c_ref, v2_ref, c1_ref, c2_ref,
               wecn_ref, wecc_ref, wicn_ref, wicc_ref,
               ws1_ref, ws2_ref, wt1_ref, wt2_ref, bout_ref,
               out_ref):
    f32 = jnp.float32
    bf16 = jnp.bfloat16

    nx_f32 = nx_ref[...]                 # [TB, Nn]  raw numerical features (f32)
    nx = nx_f32.astype(bf16)
    cate = cate_ref[...]                 # [TB, Nc*E] bf16 explicit cat embeddings
    cati = cati_ref[...]                 # [TB, Nc*E] bf16 implicit cat embeddings

    def mm(a, w_ref):
        # y = a @ W.T : bf16 operands, f32 accumulation on the MXU.
        return jax.lax.dot_general(
            a.astype(bf16), w_ref[...],
            dimension_numbers=(((1,), (1,)), ((), ())),
            preferred_element_type=f32)

    def vdot(x, w_ref):
        # [TB, K] x [O, K] -> [TB, O] on the VPU/XLU (O is tiny; avoids an
        # almost-empty MXU N-dim pass per contribution).  f32 accumulation.
        o_dim = w_ref.shape[0]
        if o_dim == 1:
            return jnp.sum(x * w_ref[...], axis=-1, keepdims=True)
        cols = [jnp.sum(x * w_ref[o:o + 1, :], axis=-1, keepdims=True)
                for o in range(o_dim)]
        return jnp.concatenate(cols, axis=-1)

    def leaky_relu(v):
        return jnp.where(v >= 0, v, 0.01 * v)

    # ---- logits accumulator: bias + raw-embedding (x_concat) contributions ---
    acc = (bout_ref[...]
           + vdot(nx_f32, wecn_ref) + vdot(cate, wecc_ref)
           + vdot(nx_f32, wicn_ref) + vdot(cati, wicc_ref))        # [TB, O] f32

    # ---- ImplicitComponent (flattened [TB, E*E] layout) -----------------------
    h1 = leaky_relu(mm(nx, a1i_ref) + mm(cati, v1c_ref) + c1_ref[...])
    acc = acc + vdot(h1, wt1_ref)
    h2 = leaky_relu(mm(h1, v2_ref) + c2_ref[...])
    acc = acc + vdot(h2, wt2_ref)

    # ---- ExplicitComponent ----------------------------------------------------
    # xk_flat[b, p*E + e] == xk[b, e, p] of the torch module.
    x0 = mm(nx, a0e_ref) + mm(cate, w0c_ref)                       # [TB, E*E]
    x1 = mm(x0 * x0, w1_ref) + b1_ref[...]
    acc = acc + vdot(x1, ws1_ref)
    x2 = mm(x1 * x0, w2_ref) + b2_ref[...]
    acc = acc + vdot(x2, ws2_ref)

    # task == 'binary_classification'
    out_ref[...] = jax.nn.sigmoid(acc)


# ----------------------------------------------------------------------------
# Parameter init (mirrors the torch module's structure)
# ----------------------------------------------------------------------------
def init_params(key, num_numerical, num_categorical, num_categories, E, out_size):
    F = num_numerical + num_categorical
    D = 2 * F * E + 4 * E
    keys = list(jax.random.split(key, 24))
    ki = iter(keys)

    def u(k, shape, s=0.1):
        return jax.random.uniform(k, shape, jnp.float32, -s, s)

    p = {}
    p['exp_num_w'] = u(next(ki), (num_numerical, E), 1e-4)
    p['imp_num_w'] = u(next(ki), (num_numerical, E), 1e-4)

    def make_cat_tables(kk):
        tabs = []
        ks = jax.random.split(kk, num_categorical)
        for i in range(num_categorical):
            t = u(ks[i], (num_categories[i] + 1, E), 1e-4)
            t = t.at[-1].set(0.0)   # padding_idx row
            tabs.append(t)
        return tabs

    p['exp_cat_tables'] = make_cat_tables(next(ki))
    p['imp_cat_tables'] = make_cat_tables(next(ki))

    # ExplicitComponent(F, E, num_layers=2)
    p['w0e'] = u(next(ki), (E, F))
    p['w1e'] = u(next(ki), (E, E)); p['b1e'] = u(next(ki), (1, E))
    p['w2e'] = u(next(ki), (E, E)); p['b2e'] = u(next(ki), (1, E))
    # ImplicitComponent(F, E, num_layers=2)
    p['w1i'] = u(next(ki), (E, F)); p['b1i'] = u(next(ki), (1, E))
    p['w2i'] = u(next(ki), (E, E)); p['b2i'] = u(next(ki), (1, E))
    # Output Linear(D, out_size)
    p['wout'] = u(next(ki), (out_size, D))
    p['bout'] = u(next(ki), (1, out_size))
    p['dims'] = (num_numerical, num_categorical, E, F, out_size)
    return p


# ----------------------------------------------------------------------------
# Host-side weight preprocessing: kron-expansion + folding of the numerical
# outer-product embeddings and of the per-layer sums / output-weight split.
# ----------------------------------------------------------------------------
def _prepare_weights(p):
    Nn, Nc, E, F, O = p['dims']
    E2, NnE, FE = E * E, Nn * E, F * E
    eye = jnp.eye(E, dtype=jnp.float32)
    bf = lambda x: x.astype(jnp.bfloat16)
    f32 = lambda x: x.astype(jnp.float32)

    def kron_eye(w):                 # [o, i] -> kron(w, I_E) : [o*E, i*E]
        o, i = w.shape
        return jnp.einsum('oi,ab->oaib', w, eye).reshape(o * E, i * E)

    def num_expand(num_w):           # [Nn, E] -> block-diagonal [Nn, Nn*E]
        return (jnp.eye(Nn, dtype=jnp.float32)[:, :, None]
                * num_w[:, None, :]).reshape(Nn, NnE)

    NEe = num_expand(p['exp_num_w'])
    NEi = num_expand(p['imp_num_w'])

    W0 = kron_eye(p['w0e'])                          # [E2, F*E]
    a0e = W0[:, :NnE] @ NEe.T                        # [E2, Nn]  (num path folded)
    w0c = W0[:, NnE:]                                # [E2, Nc*E]
    W1 = kron_eye(p['w1e']); B1 = jnp.repeat(p['b1e'], E, axis=1)   # [1, E2]
    W2 = kron_eye(p['w2e']); B2 = jnp.repeat(p['b2e'], E, axis=1)

    V1 = kron_eye(p['w1i'])
    a1i = V1[:, :NnE] @ NEi.T
    v1c = V1[:, NnE:]
    V2 = kron_eye(p['w2i'])
    C1 = jnp.repeat(p['b1i'], E, axis=1); C2 = jnp.repeat(p['b2i'], E, axis=1)

    w = p['wout']                                    # [O, D]
    wec, wic = w[:, :FE], w[:, FE:2 * FE]
    wecn = wec[:, :NnE] @ NEe.T                      # [O, Nn]
    wecc = wec[:, NnE:]                              # [O, Nc*E]
    wicn = wic[:, :NnE] @ NEi.T
    wicc = wic[:, NnE:]
    # fold the per-layer sums (xi.sum(dim=2)) into the output weights:
    ws1 = jnp.tile(w[:, 2 * FE:2 * FE + E], (1, E))              # [O, E2]
    ws2 = jnp.tile(w[:, 2 * FE + E:2 * FE + 2 * E], (1, E))
    wt1 = jnp.tile(w[:, 2 * FE + 2 * E:2 * FE + 3 * E], (1, E))
    wt2 = jnp.tile(w[:, 2 * FE + 3 * E:], (1, E))
    bout = f32(p['bout'])                                        # [1, O]

    return (bf(a0e), bf(w0c), bf(W1), f32(B1), bf(W2), f32(B2),
            bf(a1i), bf(v1c), bf(V2), f32(C1), f32(C2),
            f32(wecn), f32(wecc), f32(wicn), f32(wicc),
            f32(ws1), f32(ws2), f32(wt1), f32(wt2), bout)


# ----------------------------------------------------------------------------
# Glue: categorical embedding gathers (kept in XLA), batch-tile selection
# ----------------------------------------------------------------------------
def _cat_embed(categorical_x, tables):
    embs = [tab[categorical_x[:, i]] for i, tab in enumerate(tables)]   # [B, E] each
    return jnp.concatenate(embs, axis=1).astype(jnp.bfloat16)           # [B, Nc*E]


def _choose_tb(B, block_b):
    """Batch tile: prefer a TB dividing B (no pad), >=2 grid steps, <= block_b."""
    block_b = max(128, (block_b // 128) * 128)
    if B < 256:
        return max(16, -(-B // 16) * 16)            # single tile, sublane-aligned
    cap = max(128, min(block_b, (B // 2) // 128 * 128))   # grid >= 2 steps
    for tb in range(cap, 127, -128):
        if B % tb == 0:
            return tb
    return cap                                      # ragged tail -> pad fallback


def xin_forward(numerical_x, categorical_x, p, block_b=512):
    Nn, Nc, E, F, O = p['dims']
    B = numerical_x.shape[0]
    NcE = Nc * E

    nx = numerical_x.astype(jnp.float32)                         # [B, Nn]
    cate = _cat_embed(categorical_x, p['exp_cat_tables'])        # [B, Nc*E] bf16
    cati = _cat_embed(categorical_x, p['imp_cat_tables'])

    TB = _choose_tb(B, block_b)
    B_pad = -(-B // TB) * TB
    if B_pad != B:
        pad = ((0, B_pad - B), (0, 0))
        nx = jnp.pad(nx, pad)
        cate = jnp.pad(cate, pad)
        cati = jnp.pad(cati, pad)

    weights = _prepare_weights(p)

    def act_spec(k):
        return pl.BlockSpec((TB, k), lambda i: (i, 0))

    def build(single_buffer_weights):
        if single_buffer_weights:
            # grid-invariant weights: single-buffer (double-buffering a constant
            # block only wastes VMEM).
            wspecs = [pl.BlockSpec(w_.shape, lambda i: (0, 0),
                                   pipeline_mode=pl.Buffered(1))
                      for w_ in weights]
        else:
            wspecs = [pl.BlockSpec(w_.shape, lambda i: (0, 0)) for w_ in weights]
        return pl.pallas_call(
            xin_kernel,
            out_shape=jax.ShapeDtypeStruct((B_pad, O), jnp.float32),
            grid=(B_pad // TB,),
            in_specs=[act_spec(Nn), act_spec(NcE), act_spec(NcE)] + wspecs,
            out_specs=pl.BlockSpec((TB, O), lambda i: (i, 0)),
            compiler_params=pltpu.CompilerParams(
                dimension_semantics=("parallel",),      # 2 TCs on v7x when grid>=2
                vmem_limit_bytes=32 * 1024 * 1024),     # explicit (v5e default is 16 MiB)
        )

    try:
        out = build(True)(nx, cate, cati, *weights)
    except Exception:
        # Fallback if this JAX build rejects pipeline_mode=pl.Buffered(1).
        out = build(False)(nx, cate, cati, *weights)

    return out[:B]


# ----------------------------------------------------------------------------
# Pure-JAX f32 reference (same math as the torch module) for a correctness check
# ----------------------------------------------------------------------------
def _full_concat(numerical_x, categorical_x, num_w, cat_tables):
    B = numerical_x.shape[0]
    num_emb = numerical_x[:, :, None] * num_w[None, :, :]                 # [B, Nn, E]
    cat_emb = jnp.stack(
        [tab[categorical_x[:, i]] for i, tab in enumerate(cat_tables)], axis=1)
    return jnp.concatenate([num_emb, cat_emb], axis=1).reshape(B, -1)     # [B, F*E]


def xin_ref(numerical_x, categorical_x, p):
    Nn, Nc, E, F, O = p['dims']
    ce = _full_concat(numerical_x, categorical_x, p['exp_num_w'], p['exp_cat_tables'])
    ci = _full_concat(numerical_x, categorical_x, p['imp_num_w'], p['imp_cat_tables'])
    B = ce.shape[0]
    exp_stack = ce.reshape(B, F, E).transpose(0, 2, 1)           # [B, E, F]
    imp_stack = ci.reshape(B, F, E).transpose(0, 2, 1)

    def leaky_relu(v):
        return jnp.where(v >= 0, v, 0.01 * v)

    x0 = jnp.einsum('bef,of->beo', exp_stack, p['w0e'])
    x1 = jnp.einsum('beo,po->bep', x0 * x0, p['w1e']) + p['b1e']
    s1 = x1.sum(axis=2)
    x2 = jnp.einsum('bep,qp->beq', x1 * x0, p['w2e']) + p['b2e']
    s2 = x2.sum(axis=2)

    h1 = leaky_relu(jnp.einsum('bef,of->beo', imp_stack, p['w1i']) + p['b1i'])
    t1 = h1.sum(axis=2)
    h2 = leaky_relu(jnp.einsum('beo,po->bep', h1, p['w2i']) + p['b2i'])
    t2 = h2.sum(axis=2)

    feats = jnp.concatenate([ce, ci, s1, s2, t1, t2], axis=1)
    logits = feats @ p['wout'].T + p['bout']
    return jax.nn.sigmoid(logits)   # task == 'binary_classification'


# TODO(synk): task == 'classification' softmax branch not exercised (torch code
# calls torch.softmax without a dim anyway); only 'binary_classification' here.

if __name__ == "__main__":
    key = jax.random.PRNGKey(0)
    B, Nn, Nc, E, O = 8, 4, 3, 8, 1
    num_categories = [5, 7, 3]

    k_num, k_cat, k_par = jax.random.split(key, 3)
    numerical_x = jax.random.normal(k_num, (B, Nn), jnp.float32)
    categorical_x = jnp.stack(
        [jax.random.randint(jax.random.fold_in(k_cat, i), (B,), 0, num_categories[i] + 1)
         for i in range(Nc)], axis=1).astype(jnp.int32)

    params = init_params(k_par, Nn, Nc, num_categories, E, O)

    out = xin_forward(numerical_x, categorical_x, params)
    out = jax.block_until_ready(out)

    ref = xin_ref(numerical_x, categorical_x, params)
    assert out.shape == (B, O)
    # bf16 activations/weights with f32 accumulation -> relaxed tolerance vs f32 ref
    assert jnp.allclose(out, ref, atol=3e-3, rtol=1e-2), (out, ref)

    print("KERNEL_OK")
</pallas_src>

<mosaic_0001>
module attributes {stable_mosaic.version = 11 : i64} {
  func.func @xin_kernel(%arg0: i32, %arg1: memref<16x4xf32, #tpu.memory_space<vmem>>, %arg2: memref<16x24xbf16, #tpu.memory_space<vmem>>, %arg3: memref<16x24xbf16, #tpu.memory_space<vmem>>, %arg4: memref<64x4xbf16, #tpu.memory_space<vmem>>, %arg5: memref<64x24xbf16, #tpu.memory_space<vmem>>, %arg6: memref<64x64xbf16, #tpu.memory_space<vmem>>, %arg7: memref<1x64xf32, #tpu.memory_space<vmem>>, %arg8: memref<64x64xbf16, #tpu.memory_space<vmem>>, %arg9: memref<1x64xf32, #tpu.memory_space<vmem>>, %arg10: memref<64x4xbf16, #tpu.memory_space<vmem>>, %arg11: memref<64x24xbf16, #tpu.memory_space<vmem>>, %arg12: memref<64x64xbf16, #tpu.memory_space<vmem>>, %arg13: memref<1x64xf32, #tpu.memory_space<vmem>>, %arg14: memref<1x64xf32, #tpu.memory_space<vmem>>, %arg15: memref<1x4xf32, #tpu.memory_space<vmem>>, %arg16: memref<1x24xf32, #tpu.memory_space<vmem>>, %arg17: memref<1x4xf32, #tpu.memory_space<vmem>>, %arg18: memref<1x24xf32, #tpu.memory_space<vmem>>, %arg19: memref<1x64xf32, #tpu.memory_space<vmem>>, %arg20: memref<1x64xf32, #tpu.memory_space<vmem>>, %arg21: memref<1x64xf32, #tpu.memory_space<vmem>>, %arg22: memref<1x64xf32, #tpu.memory_space<vmem>>, %arg23: memref<1x1xf32, #tpu.memory_space<vmem>>, %arg24: memref<16x1xf32, #tpu.memory_space<vmem>>) attributes {dimension_semantics = [#tpu.dimension_semantics<parallel>], iteration_bounds = array<i64: 1>, scalar_prefetch = 0 : i64, scratch_operands = 0 : i64, tpu.core_type = #tpu.core_type<tc>, window_params = [{transform_indices = @transform_0, window_bounds = array<i64: 16, 4>}, {transform_indices = @transform_1, window_bounds = array<i64: 16, 24>}, {transform_indices = @transform_2, window_bounds = array<i64: 16, 24>}, {pipeline_mode = #tpu.pipeline_mode<synchronous>, transform_indices = @transform_3, window_bounds = array<i64: 64, 4>}, {pipeline_mode = #tpu.pipeline_mode<synchronous>, transform_indices = @transform_4, window_bounds = array<i64: 64, 24>}, {pipeline_mode = #tpu.pipeline_mode<synchronous>, transform_indices = @transform_5, window_bounds = array<i64: 64, 64>}, {pipeline_mode = #tpu.pipeline_mode<synchronous>, transform_indices = @transform_6, window_bounds = array<i64: 1, 64>}, {pipeline_mode = #tpu.pipeline_mode<synchronous>, transform_indices = @transform_7, window_bounds = array<i64: 64, 64>}, {pipeline_mode = #tpu.pipeline_mode<synchronous>, transform_indices = @transform_8, window_bounds = array<i64: 1, 64>}, {pipeline_mode = #tpu.pipeline_mode<synchronous>, transform_indices = @transform_9, window_bounds = array<i64: 64, 4>}, {pipeline_mode = #tpu.pipeline_mode<synchronous>, transform_indices = @transform_10, window_bounds = array<i64: 64, 24>}, {pipeline_mode = #tpu.pipeline_mode<synchronous>, transform_indices = @transform_11, window_bounds = array<i64: 64, 64>}, {pipeline_mode = #tpu.pipeline_mode<synchronous>, transform_indices = @transform_12, window_bounds = array<i64: 1, 64>}, {pipeline_mode = #tpu.pipeline_mode<synchronous>, transform_indices = @transform_13, window_bounds = array<i64: 1, 64>}, {pipeline_mode = #tpu.pipeline_mode<synchronous>, transform_indices = @transform_14, window_bounds = array<i64: 1, 4>}, {pipeline_mode = #tpu.pipeline_mode<synchronous>, transform_indices = @transform_15, window_bounds = array<i64: 1, 24>}, {pipeline_mode = #tpu.pipeline_mode<synchronous>, transform_indices = @transform_16, window_bounds = array<i64: 1, 4>}, {pipeline_mode = #tpu.pipeline_mode<synchronous>, transform_indices = @transform_17, window_bounds = array<i64: 1, 24>}, {pipeline_mode = #tpu.pipeline_mode<synchronous>, transform_indices = @transform_18, window_bounds = array<i64: 1, 64>}, {pipeline_mode = #tpu.pipeline_mode<synchronous>, transform_indices = @transform_19, window_bounds = array<i64: 1, 64>}, {pipeline_mode = #tpu.pipeline_mode<synchronous>, transform_indices = @transform_20, window_bounds = array<i64: 1, 64>}, {pipeline_mode = #tpu.pipeline_mode<synchronous>, transform_indices = @transform_21, window_bounds = array<i64: 1, 64>}, {pipeline_mode = #tpu.pipeline_mode<synchronous>, transform_indices = @transform_22, window_bounds = array<i64: 1, 1>}, {transform_indices = @transform_23, window_bounds = array<i64: 16, 1>}]} {
    %c0 = arith.constant 0 : index
    %c0_0 = arith.constant 0 : index
    %0 = vector.load %arg1[%c0, %c0_0] : memref<16x4xf32, #tpu.memory_space<vmem>>, vector<16x4xf32>
    %1 = arith.truncf %0 : vector<16x4xf32> to vector<16x4xbf16>
    %c0_1 = arith.constant 0 : index
    %c0_2 = arith.constant 0 : index
    %2 = vector.load %arg2[%c0_1, %c0_2] : memref<16x24xbf16, #tpu.memory_space<vmem>>, vector<16x24xbf16>
    %c0_3 = arith.constant 0 : index
    %c0_4 = arith.constant 0 : index
    %3 = vector.load %arg3[%c0_3, %c0_4] : memref<16x24xbf16, #tpu.memory_space<vmem>>, vector<16x24xbf16>
    %c0_5 = arith.constant 0 : index
    %c0_6 = arith.constant 0 : index
    %4 = vector.load %arg23[%c0_5, %c0_6] : memref<1x1xf32, #tpu.memory_space<vmem>>, vector<1x1xf32>
    %c0_7 = arith.constant 0 : index
    %c0_8 = arith.constant 0 : index
    %5 = vector.load %arg15[%c0_7, %c0_8] : memref<1x4xf32, #tpu.memory_space<vmem>>, vector<1x4xf32>
    %6 = vector.broadcast %5 : vector<1x4xf32> to vector<16x4xf32>
    %7 = arith.mulf %0, %6 : vector<16x4xf32>
    %cst = arith.constant dense<0.000000e+00> : vector<16xf32>
    %8 = vector.multi_reduction <add>, %7, %cst [1] : vector<16x4xf32> to vector<16xf32>
    %9 = vector.shape_cast %8 : vector<16xf32> to vector<16x1xf32>
    %10 = vector.broadcast %4 : vector<1x1xf32> to vector<16x1xf32>
    %11 = arith.addf %10, %9 : vector<16x1xf32>
    %c0_9 = arith.constant 0 : index
    %c0_10 = arith.constant 0 : index
    %12 = vector.load %arg16[%c0_9, %c0_10] : memref<1x24xf32, #tpu.memory_space<vmem>>, vector<1x24xf32>
    %13 = arith.extf %2 : vector<16x24xbf16> to vector<16x24xf32>
    %14 = vector.broadcast %12 : vector<1x24xf32> to vector<16x24xf32>
    %15 = arith.mulf %13, %14 : vector<16x24xf32>
    %cst_11 = arith.constant dense<0.000000e+00> : vector<16xf32>
    %16 = vector.multi_reduction <add>, %15, %cst_11 [1] : vector<16x24xf32> to vector<16xf32>
    %17 = vector.shape_cast %16 : vector<16xf32> to vector<16x1xf32>
    %18 = arith.addf %11, %17 : vector<16x1xf32>
    %c0_12 = arith.constant 0 : index
    %c0_13 = arith.constant 0 : index
    %19 = vector.load %arg17[%c0_12, %c0_13] : memref<1x4xf32, #tpu.memory_space<vmem>>, vector<1x4xf32>
    %20 = vector.broadcast %19 : vector<1x4xf32> to vector<16x4xf32>
    %21 = arith.mulf %0, %20 : vector<16x4xf32>
    %cst_14 = arith.constant dense<0.000000e+00> : vector<16xf32>
    %22 = vector.multi_reduction <add>, %21, %cst_14 [1] : vector<16x4xf32> to vector<16xf32>
    %23 = vector.shape_cast %22 : vector<16xf32> to vector<16x1xf32>
    %24 = arith.addf %18, %23 : vector<16x1xf32>
    %c0_15 = arith.constant 0 : index
    %c0_16 = arith.constant 0 : index
    %25 = vector.load %arg18[%c0_15, %c0_16] : memref<1x24xf32, #tpu.memory_space<vmem>>, vector<1x24xf32>
    %26 = arith.extf %3 : vector<16x24xbf16> to vector<16x24xf32>
    %27 = vector.broadcast %25 : vector<1x24xf32> to vector<16x24xf32>
    %28 = arith.mulf %26, %27 : vector<16x24xf32>
    %cst_17 = arith.constant dense<0.000000e+00> : vector<16xf32>
    %29 = vector.multi_reduction <add>, %28, %cst_17 [1] : vector<16x24xf32> to vector<16xf32>
    %30 = vector.shape_cast %29 : vector<16xf32> to vector<16x1xf32>
    %31 = arith.addf %24, %30 : vector<16x1xf32>
    %c0_18 = arith.constant 0 : index
    %c0_19 = arith.constant 0 : index
    %32 = vector.load %arg10[%c0_18, %c0_19] : memref<64x4xbf16, #tpu.memory_space<vmem>>, vector<64x4xbf16>
    %cst_20 = arith.constant dense<0.000000e+00> : vector<16x64xf32>
    %33 = tpu.matmul %1, %32, %cst_20 {dimension_numbers = #tpu.dot_dimension_numbers<[1], [1], [0], [0], [0, 0, 1, 0], [], []>} : vector<16x4xbf16>, vector<64x4xbf16>, vector<16x64xf32> -> vector<16x64xf32>
    %c0_21 = arith.constant 0 : index
    %c0_22 = arith.constant 0 : index
    %34 = vector.load %arg11[%c0_21, %c0_22] : memref<64x24xbf16, #tpu.memory_space<vmem>>, vector<64x24xbf16>
    %cst_23 = arith.constant dense<0.000000e+00> : vector<16x64xf32>
    %35 = tpu.matmul %3, %34, %cst_23 {dimension_numbers = #tpu.dot_dimension_numbers<[1], [1], [0], [0], [0, 0, 1, 0], [], []>} : vector<16x24xbf16>, vector<64x24xbf16>, vector<16x64xf32> -> vector<16x64xf32>
    %36 = arith.addf %33, %35 : vector<16x64xf32>
    %c0_24 = arith.constant 0 : index
    %c0_25 = arith.constant 0 : index
    %37 = vector.load %arg13[%c0_24, %c0_25] : memref<1x64xf32, #tpu.memory_space<vmem>>, vector<1x64xf32>
    %38 = vector.broadcast %37 : vector<1x64xf32> to vector<16x64xf32>
    %39 = arith.addf %36, %38 : vector<16x64xf32>
    %cst_26 = arith.constant 0.000000e+00 : f32
    %40 = vector.broadcast %cst_26 : f32 to vector<16x64xf32>
    %41 = arith.cmpf oge, %39, %40 : vector<16x64xf32>
    %cst_27 = arith.constant 0.00999999977 : f32
    %42 = vector.broadcast %cst_27 : f32 to vector<16x64xf32>
    %43 = arith.mulf %42, %39 : vector<16x64xf32>
    %44 = arith.select %41, %39, %43 : vector<16x64xi1>, vector<16x64xf32>
    %c0_28 = arith.constant 0 : index
    %c0_29 = arith.constant 0 : index
    %45 = vector.load %arg21[%c0_28, %c0_29] : memref<1x64xf32, #tpu.memory_space<vmem>>, vector<1x64xf32>
    %46 = vector.broadcast %45 : vector<1x64xf32> to vector<16x64xf32>
    %47 = arith.mulf %44, %46 : vector<16x64xf32>
    %cst_30 = arith.constant dense<0.000000e+00> : vector<16xf32>
    %48 = vector.multi_reduction <add>, %47, %cst_30 [1] : vector<16x64xf32> to vector<16xf32>
    %49 = vector.shape_cast %48 : vector<16xf32> to vector<16x1xf32>
    %50 = arith.addf %31, %49 : vector<16x1xf32>
    %51 = arith.truncf %44 : vector<16x64xf32> to vector<16x64xbf16>
    %c0_31 = arith.constant 0 : index
    %c0_32 = arith.constant 0 : index
    %52 = vector.load %arg12[%c0_31, %c0_32] : memref<64x64xbf16, #tpu.memory_space<vmem>>, vector<64x64xbf16>
    %cst_33 = arith.constant dense<0.000000e+00> : vector<16x64xf32>
    %53 = tpu.matmul %51, %52, %cst_33 {dimension_numbers = #tpu.dot_dimension_numbers<[1], [1], [0], [0], [0, 0, 1, 0], [], []>} : vector<16x64xbf16>, vector<64x64xbf16>, vector<16x64xf32> -> vector<16x64xf32>
    %c0_34 = arith.constant 0 : index
    %c0_35 = arith.constant 0 : index
    %54 = vector.load %arg14[%c0_34, %c0_35] : memref<1x64xf32, #tpu.memory_space<vmem>>, vector<1x64xf32>
    %55 = vector.broadcast %54 : vector<1x64xf32> to vector<16x64xf32>
    %56 = arith.addf %53, %55 : vector<16x64xf32>
    %cst_36 = arith.constant 0.000000e+00 : f32
    %57 = vector.broadcast %cst_36 : f32 to vector<16x64xf32>
    %58 = arith.cmpf oge, %56, %57 : vector<16x64xf32>
    %cst_37 = arith.constant 0.00999999977 : f32
    %59 = vector.broadcast %cst_37 : f32 to vector<16x64xf32>
    %60 = arith.mulf %59, %56 : vector<16x64xf32>
    %61 = arith.select %58, %56, %60 : vector<16x64xi1>, vector<16x64xf32>
    %c0_38 = arith.constant 0 : index
    %c0_39 = arith.constant 0 : index
    %62 = vector.load %arg22[%c0_38, %c0_39] : memref<1x64xf32, #tpu.memory_space<vmem>>, vector<1x64xf32>
    %63 = vector.broadcast %62 : vector<1x64xf32> to vector<16x64xf32>
    %64 = arith.mulf %61, %63 : vector<16x64xf32>
    %cst_40 = arith.constant dense<0.000000e+00> : vector<16xf32>
    %65 = vector.multi_reduction <add>, %64, %cst_40 [1] : vector<16x64xf32> to vector<16xf32>
    %66 = vector.shape_cast %65 : vector<16xf32> to vector<16x1xf32>
    %67 = arith.addf %50, %66 : vector<16x1xf32>
    %c0_41 = arith.constant 0 : index
    %c0_42 = arith.constant 0 : index
    %68 = vector.load %arg4[%c0_41, %c0_42] : memref<64x4xbf16, #tpu.memory_space<vmem>>, vector<64x4xbf16>
    %cst_43 = arith.constant dense<0.000000e+00> : vector<16x64xf32>
    %69 = tpu.matmul %1, %68, %cst_43 {dimension_numbers = #tpu.dot_dimension_numbers<[1], [1], [0], [0], [0, 0, 1, 0], [], []>} : vector<16x4xbf16>, vector<64x4xbf16>, vector<16x64xf32> -> vector<16x64xf32>
    %c0_44 = arith.constant 0 : index
    %c0_45 = arith.constant 0 : index
    %70 = vector.load %arg5[%c0_44, %c0_45] : memref<64x24xbf16, #tpu.memory_space<vmem>>, vector<64x24xbf16>
    %cst_46 = arith.constant dense<0.000000e+00> : vector<16x64xf32>
    %71 = tpu.matmul %2, %70, %cst_46 {dimension_numbers = #tpu.dot_dimension_numbers<[1], [1], [0], [0], [0, 0, 1, 0], [], []>} : vector<16x24xbf16>, vector<64x24xbf16>, vector<16x64xf32> -> vector<16x64xf32>
    %72 = arith.addf %69, %71 : vector<16x64xf32>
    %73 = arith.mulf %72, %72 : vector<16x64xf32>
    %74 = arith.truncf %73 : vector<16x64xf32> to vector<16x64xbf16>
    %c0_47 = arith.constant 0 : index
    %c0_48 = arith.constant 0 : index
    %75 = vector.load %arg6[%c0_47, %c0_48] : memref<64x64xbf16, #tpu.memory_space<vmem>>, vector<64x64xbf16>
    %cst_49 = arith.constant dense<0.000000e+00> : vector<16x64xf32>
    %76 = tpu.matmul %74, %75, %cst_49 {dimension_numbers = #tpu.dot_dimension_numbers<[1], [1], [0], [0], [0, 0, 1, 0], [], []>} : vector<16x64xbf16>, vector<64x64xbf16>, vector<16x64xf32> -> vector<16x64xf32>
    %c0_50 = arith.constant 0 : index
    %c0_51 = arith.constant 0 : index
    %77 = vector.load %arg7[%c0_50, %c0_51] : memref<1x64xf32, #tpu.memory_space<vmem>>, vector<1x64xf32>
    %78 = vector.broadcast %77 : vector<1x64xf32> to vector<16x64xf32>
    %79 = arith.addf %76, %78 : vector<16x64xf32>
    %c0_52 = arith.constant 0 : index
    %c0_53 = arith.constant 0 : index
    %80 = vector.load %arg19[%c0_52, %c0_53] : memref<1x64xf32, #tpu.memory_space<vmem>>, vector<1x64xf32>
    %81 = vector.broadcast %80 : vector<1x64xf32> to vector<16x64xf32>
    %82 = arith.mulf %79, %81 : vector<16x64xf32>
    %cst_54 = arith.constant dense<0.000000e+00> : vector<16xf32>
    %83 = vector.multi_reduction <add>, %82, %cst_54 [1] : vector<16x64xf32> to vector<16xf32>
    %84 = vector.shape_cast %83 : vector<16xf32> to vector<16x1xf32>
    %85 = arith.addf %67, %84 : vector<16x1xf32>
    %86 = arith.mulf %79, %72 : vector<16x64xf32>
    %87 = arith.truncf %86 : vector<16x64xf32> to vector<16x64xbf16>
    %c0_55 = arith.constant 0 : index
    %c0_56 = arith.constant 0 : index
    %88 = vector.load %arg8[%c0_55, %c0_56] : memref<64x64xbf16, #tpu.memory_space<vmem>>, vector<64x64xbf16>
    %cst_57 = arith.constant dense<0.000000e+00> : vector<16x64xf32>
    %89 = tpu.matmul %87, %88, %cst_57 {dimension_numbers = #tpu.dot_dimension_numbers<[1], [1], [0], [0], [0, 0, 1, 0], [], []>} : vector<16x64xbf16>, vector<64x64xbf16>, vector<16x64xf32> -> vector<16x64xf32>
    %c0_58 = arith.constant 0 : index
    %c0_59 = arith.constant 0 : index
    %90 = vector.load %arg9[%c0_58, %c0_59] : memref<1x64xf32, #tpu.memory_space<vmem>>, vector<1x64xf32>
    %91 = vector.broadcast %90 : vector<1x64xf32> to vector<16x64xf32>
    %92 = arith.addf %89, %91 : vector<16x64xf32>
    %c0_60 = arith.constant 0 : index
    %c0_61 = arith.constant 0 : index
    %93 = vector.load %arg20[%c0_60, %c0_61] : memref<1x64xf32, #tpu.memory_space<vmem>>, vector<1x64xf32>
    %94 = vector.broadcast %93 : vector<1x64xf32> to vector<16x64xf32>
    %95 = arith.mulf %92, %94 : vector<16x64xf32>
    %cst_62 = arith.constant dense<0.000000e+00> : vector<16xf32>
    %96 = vector.multi_reduction <add>, %95, %cst_62 [1] : vector<16x64xf32> to vector<16xf32>
    %97 = vector.shape_cast %96 : vector<16xf32> to vector<16x1xf32>
    %98 = arith.addf %85, %97 : vector<16x1xf32>
    %99 = arith.negf %98 : vector<16x1xf32>
    %100 = math.exp %99 : vector<16x1xf32>
    %cst_63 = arith.constant 1.000000e+00 : f32
    %101 = vector.broadcast %cst_63 : f32 to vector<16x1xf32>
    %102 = arith.addf %101, %100 : vector<16x1xf32>
    %103 = arith.divf %101, %102 : vector<16x1xf32>
    %c0_64 = arith.constant 0 : index
    %c0_65 = arith.constant 0 : index
    %104 = vector.load %arg24[%c0_64, %c0_65] : memref<16x1xf32, #tpu.memory_space<vmem>>, vector<16x1xf32>
    tpu.vector_store %arg24[%c0_64, %c0_65], %103 {strides = array<i32>} : memref<16x1xf32, #tpu.memory_space<vmem>>, vector<16x1xf32>,
    return
  }
  func.func @transform_0(%arg0: i32) -> (i32, i32) {
    %c0_i32 = arith.constant 0 : i32
    %c0_i32_0 = arith.constant 0 : i32
    return %arg0, %c0_i32 : i32, i32
  }
  func.func @transform_1(%arg0: i32) -> (i32, i32) {
    %c0_i32 = arith.constant 0 : i32
    %c0_i32_0 = arith.constant 0 : i32
    return %arg0, %c0_i32 : i32, i32
  }
  func.func @transform_2(%arg0: i32) -> (i32, i32) {
    %c0_i32 = arith.constant 0 : i32
    %c0_i32_0 = arith.constant 0 : i32
    return %arg0, %c0_i32 : i32, i32
  }
  func.func @transform_3(%arg0: i32) -> (i32, i32) {
    %c0_i32 = arith.constant 0 : i32
    %c0_i32_0 = arith.constant 0 : i32
    %c0_i32_1 = arith.constant 0 : i32
    return %c0_i32, %c0_i32_0 : i32, i32
  }
  func.func @transform_4(%arg0: i32) -> (i32, i32) {
    %c0_i32 = arith.constant 0 : i32
    %c0_i32_0 = arith.constant 0 : i32
    %c0_i32_1 = arith.constant 0 : i32
    return %c0_i32, %c0_i32_0 : i32, i32
  }
  func.func @transform_5(%arg0: i32) -> (i32, i32) {
    %c0_i32 = arith.constant 0 : i32
    %c0_i32_0 = arith.constant 0 : i32
    %c0_i32_1 = arith.constant 0 : i32
    return %c0_i32, %c0_i32_0 : i32, i32
  }
  func.func @transform_6(%arg0: i32) -> (i32, i32) {
    %c0_i32 = arith.constant 0 : i32
    %c0_i32_0 = arith.constant 0 : i32
    %c0_i32_1 = arith.constant 0 : i32
    return %c0_i32, %c0_i32_0 : i32, i32
  }
  func.func @transform_7(%arg0: i32) -> (i32, i32) {
    %c0_i32 = arith.constant 0 : i32
    %c0_i32_0 = arith.constant 0 : i32
    %c0_i32_1 = arith.constant 0 : i32
    return %c0_i32, %c0_i32_0 : i32, i32
  }
  func.func @transform_8(%arg0: i32) -> (i32, i32) {
    %c0_i32 = arith.constant 0 : i32
    %c0_i32_0 = arith.constant 0 : i32
    %c0_i32_1 = arith.constant 0 : i32
    return %c0_i32, %c0_i32_0 : i32, i32
  }
  func.func @transform_9(%arg0: i32) -> (i32, i32) {
    %c0_i32 = arith.constant 0 : i32
    %c0_i32_0 = arith.constant 0 : i32
    %c0_i32_1 = arith.constant 0 : i32
    return %c0_i32, %c0_i32_0 : i32, i32
  }
  func.func @transform_10(%arg0: i32) -> (i32, i32) {
    %c0_i32 = arith.constant 0 : i32
    %c0_i32_0 = arith.constant 0 : i32
    %c0_i32_1 = arith.constant 0 : i32
    return %c0_i32, %c0_i32_0 : i32, i32
  }
  func.func @transform_11(%arg0: i32) -> (i32, i32) {
    %c0_i32 = arith.constant 0 : i32
    %c0_i32_0 = arith.constant 0 : i32
    %c0_i32_1 = arith.constant 0 : i32
    return %c0_i32, %c0_i32_0 : i32, i32
  }
  func.func @transform_12(%arg0: i32) -> (i32, i32) {
    %c0_i32 = arith.constant 0 : i32
    %c0_i32_0 = arith.constant 0 : i32
    %c0_i32_1 = arith.constant 0 : i32
    return %c0_i32, %c0_i32_0 : i32, i32
  }
  func.func @transform_13(%arg0: i32) -> (i32, i32) {
    %c0_i32 = arith.constant 0 : i32
    %c0_i32_0 = arith.constant 0 : i32
    %c0_i32_1 = arith.constant 0 : i32
    return %c0_i32, %c0_i32_0 : i32, i32
  }
  func.func @transform_14(%arg0: i32) -> (i32, i32) {
    %c0_i32 = arith.constant 0 : i32
    %c0_i32_0 = arith.constant 0 : i32
    %c0_i32_1 = arith.constant 0 : i32
    return %c0_i32, %c0_i32_0 : i32, i32
  }
  func.func @transform_15(%arg0: i32) -> (i32, i32) {
    %c0_i32 = arith.constant 0 : i32
    %c0_i32_0 = arith.constant 0 : i32
    %c0_i32_1 = arith.constant 0 : i32
    return %c0_i32, %c0_i32_0 : i32, i32
  }
  func.func @transform_16(%arg0: i32) -> (i32, i32) {
    %c0_i32 = arith.constant 0 : i32
    %c0_i32_0 = arith.constant 0 : i32
    %c0_i32_1 = arith.constant 0 : i32
    return %c0_i32, %c0_i32_0 : i32, i32
  }
  func.func @transform_17(%arg0: i32) -> (i32, i32) {
    %c0_i32 = arith.constant 0 : i32
    %c0_i32_0 = arith.constant 0 : i32
    %c0_i32_1 = arith.constant 0 : i32
    return %c0_i32, %c0_i32_0 : i32, i32
  }
  func.func @transform_18(%arg0: i32) -> (i32, i32) {
    %c0_i32 = arith.constant 0 : i32
    %c0_i32_0 = arith.constant 0 : i32
    %c0_i32_1 = arith.constant 0 : i32
    return %c0_i32, %c0_i32_0 : i32, i32
  }
  func.func @transform_19(%arg0: i32) -> (i32, i32) {
    %c0_i32 = arith.constant 0 : i32
    %c0_i32_0 = arith.constant 0 : i32
    %c0_i32_1 = arith.constant 0 : i32
    return %c0_i32, %c0_i32_0 : i32, i32
  }
  func.func @transform_20(%arg0: i32) -> (i32, i32) {
    %c0_i32 = arith.constant 0 : i32
    %c0_i32_0 = arith.constant 0 : i32
    %c0_i32_1 = arith.constant 0 : i32
    return %c0_i32, %c0_i32_0 : i32, i32
  }
  func.func @transform_21(%arg0: i32) -> (i32, i32) {
    %c0_i32 = arith.constant 0 : i32
    %c0_i32_0 = arith.constant 0 : i32
    %c0_i32_1 = arith.constant 0 : i32
    return %c0_i32, %c0_i32_0 : i32, i32
  }
  func.func @transform_22(%arg0: i32) -> (i32, i32) {
    %c0_i32 = arith.constant 0 : i32
    %c0_i32_0 = arith.constant 0 : i32
    %c0_i32_1 = arith.constant 0 : i32
    return %c0_i32, %c0_i32_0 : i32, i32
  }
  func.func @transform_23(%arg0: i32) -> (i32, i32) {
    %c0_i32 = arith.constant 0 : i32
    %c0_i32_0 = arith.constant 0 : i32
    return %arg0, %c0_i32 : i32, i32
  }
}

module attributes {stable_mosaic.version = 11 : i64} {
  func.func @xin_kernel(%arg0: i32, %arg1: memref<16x4xf32, #tpu.memory_space<vmem>>, %arg2: memref<16x24xbf16, #tpu.memory_space<vmem>>, %arg3: memref<16x24xbf16, #tpu.memory_space<vmem>>, %arg4: memref<64x4xbf16, #tpu.memory_space<vmem>>, %arg5: memref<64x24xbf16, #tpu.memory_space<vmem>>, %arg6: memref<64x64xbf16, #tpu.memory_space<vmem>>, %arg7: memref<1x64xf32, #tpu.memory_space<vmem>>, %arg8: memref<64x64xbf16, #tpu.memory_space<vmem>>, %arg9: memref<1x64xf32, #tpu.memory_space<vmem>>, %arg10: memref<64x4xbf16, #tpu.memory_space<vmem>>, %arg11: memref<64x24xbf16, #tpu.memory_space<vmem>>, %arg12: memref<64x64xbf16, #tpu.memory_space<vmem>>, %arg13: memref<1x64xf32, #tpu.memory_space<vmem>>, %arg14: memref<1x64xf32, #tpu.memory_space<vmem>>, %arg15: memref<1x4xf32, #tpu.memory_space<vmem>>, %arg16: memref<1x24xf32, #tpu.memory_space<vmem>>, %arg17: memref<1x4xf32, #tpu.memory_space<vmem>>, %arg18: memref<1x24xf32, #tpu.memory_space<vmem>>, %arg19: memref<1x64xf32, #tpu.memory_space<vmem>>, %arg20: memref<1x64xf32, #tpu.memory_space<vmem>>, %arg21: memref<1x64xf32, #tpu.memory_space<vmem>>, %arg22: memref<1x64xf32, #tpu.memory_space<vmem>>, %arg23: memref<1x1xf32, #tpu.memory_space<vmem>>, %arg24: memref<16x1xf32, #tpu.memory_space<vmem>>) attributes {dimension_semantics = [#tpu.dimension_semantics<parallel>], iteration_bounds = array<i64: 1>, scalar_prefetch = 0 : i64, scratch_operands = 0 : i64, tpu.core_type = #tpu.core_type<tc>, window_params = [{transform_indices = @transform_0, window_bounds = array<i64: 16, 4>}, {transform_indices = @transform_1, window_bounds = array<i64: 16, 24>}, {transform_indices = @transform_2, window_bounds = array<i64: 16, 24>}, {pipeline_mode = #tpu.pipeline_mode<synchronous>, transform_indices = @transform_3, window_bounds = array<i64: 64, 4>}, {pipeline_mode = #tpu.pipeline_mode<synchronous>, transform_indices = @transform_4, window_bounds = array<i64: 64, 24>}, {pipeline_mode = #tpu.pipeline_mode<synchronous>, transform_indices = @transform_5, window_bounds = array<i64: 64, 64>}, {pipeline_mode = #tpu.pipeline_mode<synchronous>, transform_indices = @transform_6, window_bounds = array<i64: 1, 64>}, {pipeline_mode = #tpu.pipeline_mode<synchronous>, transform_indices = @transform_7, window_bounds = array<i64: 64, 64>}, {pipeline_mode = #tpu.pipeline_mode<synchronous>, transform_indices = @transform_8, window_bounds = array<i64: 1, 64>}, {pipeline_mode = #tpu.pipeline_mode<synchronous>, transform_indices = @transform_9, window_bounds = array<i64: 64, 4>}, {pipeline_mode = #tpu.pipeline_mode<synchronous>, transform_indices = @transform_10, window_bounds = array<i64: 64, 24>}, {pipeline_mode = #tpu.pipeline_mode<synchronous>, transform_indices = @transform_11, window_bounds = array<i64: 64, 64>}, {pipeline_mode = #tpu.pipeline_mode<synchronous>, transform_indices = @transform_12, window_bounds = array<i64: 1, 64>}, {pipeline_mode = #tpu.pipeline_mode<synchronous>, transform_indices = @transform_13, window_bounds = array<i64: 1, 64>}, {pipeline_mode = #tpu.pipeline_mode<synchronous>, transform_indices = @transform_14, window_bounds = array<i64: 1, 4>}, {pipeline_mode = #tpu.pipeline_mode<synchronous>, transform_indices = @transform_15, window_bounds = array<i64: 1, 24>}, {pipeline_mode = #tpu.pipeline_mode<synchronous>, transform_indices = @transform_16, window_bounds = array<i64: 1, 4>}, {pipeline_mode = #tpu.pipeline_mode<synchronous>, transform_indices = @transform_17, window_bounds = array<i64: 1, 24>}, {pipeline_mode = #tpu.pipeline_mode<synchronous>, transform_indices = @transform_18, window_bounds = array<i64: 1, 64>}, {pipeline_mode = #tpu.pipeline_mode<synchronous>, transform_indices = @transform_19, window_bounds = array<i64: 1, 64>}, {pipeline_mode = #tpu.pipeline_mode<synchronous>, transform_indices = @transform_20, window_bounds = array<i64: 1, 64>}, {pipeline_mode = #tpu.pipeline_mode<synchronous>, transform_indices = @transform_21, window_bounds = array<i64: 1, 64>}, {pipeline_mode = #tpu.pipeline_mode<synchronous>, transform_indices = @transform_22, window_bounds = array<i64: 1, 1>}, {transform_indices = @transform_23, window_bounds = array<i64: 16, 1>}]} {
    %c0 = arith.constant 0 : index
    %c0_0 = arith.constant 0 : index
    %0 = vector.load %arg1[%c0, %c0_0] : memref<16x4xf32, #tpu.memory_space<vmem>>, vector<16x4xf32>
    %1 = arith.truncf %0 : vector<16x4xf32> to vector<16x4xbf16>
    %c0_1 = arith.constant 0 : index
    %c0_2 = arith.constant 0 : index
    %2 = vector.load %arg2[%c0_1, %c0_2] : memref<16x24xbf16, #tpu.memory_space<vmem>>, vector<16x24xbf16>
    %c0_3 = arith.constant 0 : index
    %c0_4 = arith.constant 0 : index
    %3 = vector.load %arg3[%c0_3, %c0_4] : memref<16x24xbf16, #tpu.memory_space<vmem>>, vector<16x24xbf16>
    %c0_5 = arith.constant 0 : index
    %c0_6 = arith.constant 0 : index
    %4 = vector.load %arg23[%c0_5, %c0_6] : memref<1x1xf32, #tpu.memory_space<vmem>>, vector<1x1xf32>
    %c0_7 = arith.constant 0 : index
    %c0_8 = arith.constant 0 : index
    %5 = vector.load %arg15[%c0_7, %c0_8] : memref<1x4xf32, #tpu.memory_space<vmem>>, vector<1x4xf32>
    %6 = vector.broadcast %5 : vector<1x4xf32> to vector<16x4xf32>
    %7 = arith.mulf %0, %6 : vector<16x4xf32>
    %cst = arith.constant dense<0.000000e+00> : vector<16xf32>
    %8 = vector.multi_reduction <add>, %7, %cst [1] : vector<16x4xf32> to vector<16xf32>
    %9 = vector.shape_cast %8 : vector<16xf32> to vector<16x1xf32>
    %10 = vector.broadcast %4 : vector<1x1xf32> to vector<16x1xf32>
    %11 = arith.addf %10, %9 : vector<16x1xf32>
    %c0_9 = arith.constant 0 : index
    %c0_10 = arith.constant 0 : index
    %12 = vector.load %arg16[%c0_9, %c0_10] : memref<1x24xf32, #tpu.memory_space<vmem>>, vector<1x24xf32>
    %13 = arith.extf %2 : vector<16x24xbf16> to vector<16x24xf32>
    %14 = vector.broadcast %12 : vector<1x24xf32> to vector<16x24xf32>
    %15 = arith.mulf %13, %14 : vector<16x24xf32>
    %cst_11 = arith.constant dense<0.000000e+00> : vector<16xf32>
    %16 = vector.multi_reduction <add>, %15, %cst_11 [1] : vector<16x24xf32> to vector<16xf32>
    %17 = vector.shape_cast %16 : vector<16xf32> to vector<16x1xf32>
    %18 = arith.addf %11, %17 : vector<16x1xf32>
    %c0_12 = arith.constant 0 : index
    %c0_13 = arith.constant 0 : index
    %19 = vector.load %arg17[%c0_12, %c0_13] : memref<1x4xf32, #tpu.memory_space<vmem>>, vector<1x4xf32>
    %20 = vector.broadcast %19 : vector<1x4xf32> to vector<16x4xf32>
    %21 = arith.mulf %0, %20 : vector<16x4xf32>
    %cst_14 = arith.constant dense<0.000000e+00> : vector<16xf32>
    %22 = vector.multi_reduction <add>, %21, %cst_14 [1] : vector<16x4xf32> to vector<16xf32>
    %23 = vector.shape_cast %22 : vector<16xf32> to vector<16x1xf32>
    %24 = arith.addf %18, %23 : vector<16x1xf32>
    %c0_15 = arith.constant 0 : index
    %c0_16 = arith.constant 0 : index
    %25 = vector.load %arg18[%c0_15, %c0_16] : memref<1x24xf32, #tpu.memory_space<vmem>>, vector<1x24xf32>
    %26 = arith.extf %3 : vector<16x24xbf16> to vector<16x24xf32>
    %27 = vector.broadcast %25 : vector<1x24xf32> to vector<16x24xf32>
    %28 = arith.mulf %26, %27 : vector<16x24xf32>
    %cst_17 = arith.constant dense<0.000000e+00> : vector<16xf32>
    %29 = vector.multi_reduction <add>, %28, %cst_17 [1] : vector<16x24xf32> to vector<16xf32>
    %30 = vector.shape_cast %29 : vector<16xf32> to vector<16x1xf32>
    %31 = arith.addf %24, %30 : vector<16x1xf32>
    %c0_18 = arith.constant 0 : index
    %c0_19 = arith.constant 0 : index
    %32 = vector.load %arg10[%c0_18, %c0_19] : memref<64x4xbf16, #tpu.memory_space<vmem>>, vector<64x4xbf16>
    %cst_20 = arith.constant dense<0.000000e+00> : vector<16x64xf32>
    %33 = tpu.matmul %1, %32, %cst_20 {dimension_numbers = #tpu.dot_dimension_numbers<[1], [1], [0], [0], [0, 0, 1, 0], [], []>} : vector<16x4xbf16>, vector<64x4xbf16>, vector<16x64xf32> -> vector<16x64xf32>
    %c0_21 = arith.constant 0 : index
    %c0_22 = arith.constant 0 : index
    %34 = vector.load %arg11[%c0_21, %c0_22] : memref<64x24xbf16, #tpu.memory_space<vmem>>, vector<64x24xbf16>
    %cst_23 = arith.constant dense<0.000000e+00> : vector<16x64xf32>
    %35 = tpu.matmul %3, %34, %cst_23 {dimension_numbers = #tpu.dot_dimension_numbers<[1], [1], [0], [0], [0, 0, 1, 0], [], []>} : vector<16x24xbf16>, vector<64x24xbf16>, vector<16x64xf32> -> vector<16x64xf32>
    %36 = arith.addf %33, %35 : vector<16x64xf32>
    %c0_24 = arith.constant 0 : index
    %c0_25 = arith.constant 0 : index
    %37 = vector.load %arg13[%c0_24, %c0_25] : memref<1x64xf32, #tpu.memory_space<vmem>>, vector<1x64xf32>
    %38 = vector.broadcast %37 : vector<1x64xf32> to vector<16x64xf32>
    %39 = arith.addf %36, %38 : vector<16x64xf32>
    %cst_26 = arith.constant 0.000000e+00 : f32
    %40 = vector.broadcast %cst_26 : f32 to vector<16x64xf32>
    %41 = arith.cmpf oge, %39, %40 : vector<16x64xf32>
    %cst_27 = arith.constant 0.00999999977 : f32
    %42 = vector.broadcast %cst_27 : f32 to vector<16x64xf32>
    %43 = arith.mulf %42, %39 : vector<16x64xf32>
    %44 = arith.select %41, %39, %43 : vector<16x64xi1>, vector<16x64xf32>
    %c0_28 = arith.constant 0 : index
    %c0_29 = arith.constant 0 : index
    %45 = vector.load %arg21[%c0_28, %c0_29] : memref<1x64xf32, #tpu.memory_space<vmem>>, vector<1x64xf32>
    %46 = vector.broadcast %45 : vector<1x64xf32> to vector<16x64xf32>
    %47 = arith.mulf %44, %46 : vector<16x64xf32>
    %cst_30 = arith.constant dense<0.000000e+00> : vector<16xf32>
    %48 = vector.multi_reduction <add>, %47, %cst_30 [1] : vector<16x64xf32> to vector<16xf32>
    %49 = vector.shape_cast %48 : vector<16xf32> to vector<16x1xf32>
    %50 = arith.addf %31, %49 : vector<16x1xf32>
    %51 = arith.truncf %44 : vector<16x64xf32> to vector<16x64xbf16>
    %c0_31 = arith.constant 0 : index
    %c0_32 = arith.constant 0 : index
    %52 = vector.load %arg12[%c0_31, %c0_32] : memref<64x64xbf16, #tpu.memory_space<vmem>>, vector<64x64xbf16>
    %cst_33 = arith.constant dense<0.000000e+00> : vector<16x64xf32>
    %53 = tpu.matmul %51, %52, %cst_33 {dimension_numbers = #tpu.dot_dimension_numbers<[1], [1], [0], [0], [0, 0, 1, 0], [], []>} : vector<16x64xbf16>, vector<64x64xbf16>, vector<16x64xf32> -> vector<16x64xf32>
    %c0_34 = arith.constant 0 : index
    %c0_35 = arith.constant 0 : index
    %54 = vector.load %arg14[%c0_34, %c0_35] : memref<1x64xf32, #tpu.memory_space<vmem>>, vector<1x64xf32>
    %55 = vector.broadcast %54 : vector<1x64xf32> to vector<16x64xf32>
    %56 = arith.addf %53, %55 : vector<16x64xf32>
    %cst_36 = arith.constant 0.000000e+00 : f32
    %57 = vector.broadcast %cst_36 : f32 to vector<16x64xf32>
    %58 = arith.cmpf oge, %56, %57 : vector<16x64xf32>
    %cst_37 = arith.constant 0.00999999977 : f32
    %59 = vector.broadcast %cst_37 : f32 to vector<16x64xf32>
    %60 = arith.mulf %59, %56 : vector<16x64xf32>
    %61 = arith.select %58, %56, %60 : vector<16x64xi1>, vector<16x64xf32>
    %c0_38 = arith.constant 0 : index
    %c0_39 = arith.constant 0 : index
    %62 = vector.load %arg22[%c0_38, %c0_39] : memref<1x64xf32, #tpu.memory_space<vmem>>, vector<1x64xf32>
    %63 = vector.broadcast %62 : vector<1x64xf32> to vector<16x64xf32>
    %64 = arith.mulf %61, %63 : vector<16x64xf32>
    %cst_40 = arith.constant dense<0.000000e+00> : vector<16xf32>
    %65 = vector.multi_reduction <add>, %64, %cst_40 [1] : vector<16x64xf32> to vector<16xf32>
    %66 = vector.shape_cast %65 : vector<16xf32> to vector<16x1xf32>
    %67 = arith.addf %50, %66 : vector<16x1xf32>
    %c0_41 = arith.constant 0 : index
    %c0_42 = arith.constant 0 : index
    %68 = vector.load %arg4[%c0_41, %c0_42] : memref<64x4xbf16, #tpu.memory_space<vmem>>, vector<64x4xbf16>
    %cst_43 = arith.constant dense<0.000000e+00> : vector<16x64xf32>
    %69 = tpu.matmul %1, %68, %cst_43 {dimension_numbers = #tpu.dot_dimension_numbers<[1], [1], [0], [0], [0, 0, 1, 0], [], []>} : vector<16x4xbf16>, vector<64x4xbf16>, vector<16x64xf32> -> vector<16x64xf32>
    %c0_44 = arith.constant 0 : index
    %c0_45 = arith.constant 0 : index
    %70 = vector.load %arg5[%c0_44, %c0_45] : memref<64x24xbf16, #tpu.memory_space<vmem>>, vector<64x24xbf16>
    %cst_46 = arith.constant dense<0.000000e+00> : vector<16x64xf32>
    %71 = tpu.matmul %2, %70, %cst_46 {dimension_numbers = #tpu.dot_dimension_numbers<[1], [1], [0], [0], [0, 0, 1, 0], [], []>} : vector<16x24xbf16>, vector<64x24xbf16>, vector<16x64xf32> -> vector<16x64xf32>
    %72 = arith.addf %69, %71 : vector<16x64xf32>
    %73 = arith.mulf %72, %72 : vector<16x64xf32>
    %74 = arith.truncf %73 : vector<16x64xf32> to vector<16x64xbf16>
    %c0_47 = arith.constant 0 : index
    %c0_48 = arith.constant 0 : index
    %75 = vector.load %arg6[%c0_47, %c0_48] : memref<64x64xbf16, #tpu.memory_space<vmem>>, vector<64x64xbf16>
    %cst_49 = arith.constant dense<0.000000e+00> : vector<16x64xf32>
    %76 = tpu.matmul %74, %75, %cst_49 {dimension_numbers = #tpu.dot_dimension_numbers<[1], [1], [0], [0], [0, 0, 1, 0], [], []>} : vector<16x64xbf16>, vector<64x64xbf16>, vector<16x64xf32> -> vector<16x64xf32>
    %c0_50 = arith.constant 0 : index
    %c0_51 = arith.constant 0 : index
    %77 = vector.load %arg7[%c0_50, %c0_51] : memref<1x64xf32, #tpu.memory_space<vmem>>, vector<1x64xf32>
    %78 = vector.broadcast %77 : vector<1x64xf32> to vector<16x64xf32>
    %79 = arith.addf %76, %78 : vector<16x64xf32>
    %c0_52 = arith.constant 0 : index
    %c0_53 = arith.constant 0 : index
    %80 = vector.load %arg19[%c0_52, %c0_53] : memref<1x64xf32, #tpu.memory_space<vmem>>, vector<1x64xf32>
    %81 = vector.broadcast %80 : vector<1x64xf32> to vector<16x64xf32>
    %82 = arith.mulf %79, %81 : vector<16x64xf32>
    %cst_54 = arith.constant dense<0.000000e+00> : vector<16xf32>
    %83 = vector.multi_reduction <add>, %82, %cst_54 [1] : vector<16x64xf32> to vector<16xf32>
    %84 = vector.shape_cast %83 : vector<16xf32> to vector<16x1xf32>
    %85 = arith.addf %67, %84 : vector<16x1xf32>
    %86 = arith.mulf %79, %72 : vector<16x64xf32>
    %87 = arith.truncf %86 : vector<16x64xf32> to vector<16x64xbf16>
    %c0_55 = arith.constant 0 : index
    %c0_56 = arith.constant 0 : index
    %88 = vector.load %arg8[%c0_55, %c0_56] : memref<64x64xbf16, #tpu.memory_space<vmem>>, vector<64x64xbf16>
    %cst_57 = arith.constant dense<0.000000e+00> : vector<16x64xf32>
    %89 = tpu.matmul %87, %88, %cst_57 {dimension_numbers = #tpu.dot_dimension_numbers<[1], [1], [0], [0], [0, 0, 1, 0], [], []>} : vector<16x64xbf16>, vector<64x64xbf16>, vector<16x64xf32> -> vector<16x64xf32>
    %c0_58 = arith.constant 0 : index
    %c0_59 = arith.constant 0 : index
    %90 = vector.load %arg9[%c0_58, %c0_59] : memref<1x64xf32, #tpu.memory_space<vmem>>, vector<1x64xf32>
    %91 = vector.broadcast %90 : vector<1x64xf32> to vector<16x64xf32>
    %92 = arith.addf %89, %91 : vector<16x64xf32>
    %c0_60 = arith.constant 0 : index
    %c0_61 = arith.constant 0 : index
    %93 = vector.load %arg20[%c0_60, %c0_61] : memref<1x64xf32, #tpu.memory_space<vmem>>, vector<1x64xf32>
    %94 = vector.broadcast %93 : vector<1x64xf32> to vector<16x64xf32>
    %95 = arith.mulf %92, %94 : vector<16x64xf32>
    %cst_62 = arith.constant dense<0.000000e+00> : vector<16xf32>
    %96 = vector.multi_reduction <add>, %95, %cst_62 [1] : vector<16x64xf32> to vector<16xf32>
    %97 = vector.shape_cast %96 : vector<16xf32> to vector<16x1xf32>
    %98 = arith.addf %85, %97 : vector<16x1xf32>
    %99 = arith.negf %98 : vector<16x1xf32>
    %100 = math.exp %99 : vector<16x1xf32>
    %cst_63 = arith.constant 1.000000e+00 : f32
    %101 = vector.broadcast %cst_63 : f32 to vector<16x1xf32>
    %102 = arith.addf %101, %100 : vector<16x1xf32>
    %103 = arith.divf %101, %102 : vector<16x1xf32>
    %c0_64 = arith.constant 0 : index
    %c0_65 = arith.constant 0 : index
    %104 = vector.load %arg24[%c0_64, %c0_65] : memref<16x1xf32, #tpu.memory_space<vmem>>, vector<16x1xf32>
    tpu.vector_store %arg24[%c0_64, %c0_65], %103 {strides = array<i32>} : memref<16x1xf32, #tpu.memory_space<vmem>>, vector<16x1xf32>,
    return
  }
  func.func @transform_0(%arg0: i32) -> (i32, i32) {
    %c0_i32 = arith.constant 0 : i32
    %c0_i32_0 = arith.constant 0 : i32
    return %arg0, %c0_i32 : i32, i32
  }
  func.func @transform_1(%arg0: i32) -> (i32, i32) {
    %c0_i32 = arith.constant 0 : i32
    %c0_i32_0 = arith.constant 0 : i32
    return %arg0, %c0_i32 : i32, i32
  }
  func.func @transform_2(%arg0: i32) -> (i32, i32) {
    %c0_i32 = arith.constant 0 : i32
    %c0_i32_0 = arith.constant 0 : i32
    return %arg0, %c0_i32 : i32, i32
  }
  func.func @transform_3(%arg0: i32) -> (i32, i32) {
    %c0_i32 = arith.constant 0 : i32
    %c0_i32_0 = arith.constant 0 : i32
    %c0_i32_1 = arith.constant 0 : i32
    return %c0_i32, %c0_i32_0 : i32, i32
  }
  func.func @transform_4(%arg0: i32) -> (i32, i32) {
    %c0_i32 = arith.constant 0 : i32
    %c0_i32_0 = arith.constant 0 : i32
    %c0_i32_1 = arith.constant 0 : i32
    return %c0_i32, %c0_i32_0 : i32, i32
  }
  func.func @transform_5(%arg0: i32) -> (i32, i32) {
    %c0_i32 = arith.constant 0 : i32
    %c0_i32_0 = arith.constant 0 : i32
    %c0_i32_1 = arith.constant 0 : i32
    return %c0_i32, %c0_i32_0 : i32, i32
  }
  func.func @transform_6(%arg0: i32) -> (i32, i32) {
    %c0_i32 = arith.constant 0 : i32
    %c0_i32_0 = arith.constant 0 : i32
    %c0_i32_1 = arith.constant 0 : i32
    return %c0_i32, %c0_i32_0 : i32, i32
  }
  func.func @transform_7(%arg0: i32) -> (i32, i32) {
    %c0_i32 = arith.constant 0 : i32
    %c0_i32_0 = arith.constant 0 : i32
    %c0_i32_1 = arith.constant 0 : i32
    return %c0_i32, %c0_i32_0 : i32, i32
  }
  func.func @transform_8(%arg0: i32) -> (i32, i32) {
    %c0_i32 = arith.constant 0 : i32
    %c0_i32_0 = arith.constant 0 : i32
    %c0_i32_1 = arith.constant 0 : i32
    return %c0_i32, %c0_i32_0 : i32, i32
  }
  func.func @transform_9(%arg0: i32) -> (i32, i32) {
    %c0_i32 = arith.constant 0 : i32
    %c0_i32_0 = arith.constant 0 : i32
    %c0_i32_1 = arith.constant 0 : i32
    return %c0_i32, %c0_i32_0 : i32, i32
  }
  func.func @transform_10(%arg0: i32) -> (i32, i32) {
    %c0_i32 = arith.constant 0 : i32
    %c0_i32_0 = arith.constant 0 : i32
    %c0_i32_1 = arith.constant 0 : i32
    return %c0_i32, %c0_i32_0 : i32, i32
  }
  func.func @transform_11(%arg0: i32) -> (i32, i32) {
    %c0_i32 = arith.constant 0 : i32
    %c0_i32_0 = arith.constant 0 : i32
    %c0_i32_1 = arith.constant 0 : i32
    return %c0_i32, %c0_i32_0 : i32, i32
  }
  func.func @transform_12(%arg0: i32) -> (i32, i32) {
    %c0_i32 = arith.constant 0 : i32
    %c0_i32_0 = arith.constant 0 : i32
    %c0_i32_1 = arith.constant 0 : i32
    return %c0_i32, %c0_i32_0 : i32, i32
  }
  func.func @transform_13(%arg0: i32) -> (i32, i32) {
    %c0_i32 = arith.constant 0 : i32
    %c0_i32_0 = arith.constant 0 : i32
    %c0_i32_1 = arith.constant 0 : i32
    return %c0_i32, %c0_i32_0 : i32, i32
  }
  func.func @transform_14(%arg0: i32) -> (i32, i32) {
    %c0_i32 = arith.constant 0 : i32
    %c0_i32_0 = arith.constant 0 : i32
    %c0_i32_1 = arith.constant 0 : i32
    return %c0_i32, %c0_i32_0 : i32, i32
  }
  func.func @transform_15(%arg0: i32) -> (i32, i32) {
    %c0_i32 = arith.constant 0 : i32
    %c0_i32_0 = arith.constant 0 : i32
    %c0_i32_1 = arith.constant 0 : i32
    return %c0_i32, %c0_i32_0 : i32, i32
  }
  func.func @transform_16(%arg0: i32) -> (i32, i32) {
    %c0_i32 = arith.constant 0 : i32
    %c0_i32_0 = arith.constant 0 : i32
    %c0_i32_1 = arith.constant 0 : i32
    return %c0_i32, %c0_i32_0 : i32, i32
  }
  func.func @transform_17(%arg0: i32) -> (i32, i32) {
    %c0_i32 = arith.constant 0 : i32
    %c0_i32_0 = arith.constant 0 : i32
    %c0_i32_1 = arith.constant 0 : i32
    return %c0_i32, %c0_i32_0 : i32, i32
  }
  func.func @transform_18(%arg0: i32) -> (i32, i32) {
    %c0_i32 = arith.constant 0 : i32
    %c0_i32_0 = arith.constant 0 : i32
    %c0_i32_1 = arith.constant 0 : i32
    return %c0_i32, %c0_i32_0 : i32, i32
  }
  func.func @transform_19(%arg0: i32) -> (i32, i32) {
    %c0_i32 = arith.constant 0 : i32
    %c0_i32_0 = arith.constant 0 : i32
    %c0_i32_1 = arith.constant 0 : i32
    return %c0_i32, %c0_i32_0 : i32, i32
  }
  func.func @transform_20(%arg0: i32) -> (i32, i32) {
    %c0_i32 = arith.constant 0 : i32
    %c0_i32_0 = arith.constant 0 : i32
    %c0_i32_1 = arith.constant 0 : i32
    return %c0_i32, %c0_i32_0 : i32, i32
  }
  func.func @transform_21(%arg0: i32) -> (i32, i32) {
    %c0_i32 = arith.constant 0 : i32
    %c0_i32_0 = arith.constant 0 : i32
    %c0_i32_1 = arith.constant 0 : i32
    return %c0_i32, %c0_i32_0 : i32, i32
  }
  func.func @transform_22(%arg0: i32) -> (i32, i32) {
    %c0_i32 = arith.constant 0 : i32
    %c0_i32_0 = arith.constant 0 : i32
    %c0_i32_1 = arith.constant 0 : i32
    return %c0_i32, %c0_i32_0 : i32, i32
  }
  func.func @transform_23(%arg0: i32) -> (i32, i32) {
    %c0_i32 = arith.constant 0 : i32
    %c0_i32_0 = arith.constant 0 : i32
    return %arg0, %c0_i32 : i32, i32
  }
}

</mosaic_0001>

<bundles_post_ra>
// kernel: tpu_custom_call.1
= control target key start
LH: loop header
LB: loop body
LE: loop exit
PB: predicated region body
PF: predicated region fallthrough
CT: control target
= control target key end

     0   :  { %vm120_vm0 = vcmask 195584   ;;  %v1114_v0 = vmov 0.0   ;;  %vm94_vm1 = vcmask 31744   ;;  %vm1115_vm2 = vmmov 0   ;;  %s1494_s10 = inlined_call_operand.vmem [shape: bf16[64,24], index: 10, kind: input, shape index: {}]   ;;  %s1495_s9 = inlined_call_operand.vmem [shape: bf16[64,4], index: 9, kind: input, shape index: {}]   ;;  %s1496_s4 = inlined_call_operand.vmem [shape: bf16[64,24], index: 4, kind: input, shape index: {}]   ;;  %s1497_s3 = inlined_call_operand.vmem [shape: bf16[64,4], index: 3, kind: input, shape index: {}]   ;;  %s1498_s1 = inlined_call_operand.vmem [shape: bf16[16,24], index: 1, kind: input, shape index: {}]   ;;  %s1499_s0 = inlined_call_operand.vmem [shape: f32[16,4], index: 0, kind: input, shape index: {}]   ;;  %s1500_s11 = inlined_call_operand.vmem [shape: bf16[64,64], index: 11, kind: input, shape index: {}]   ;;  %s1501_s14 = inlined_call_operand.vmem [shape: f32[1,4], index: 14, kind: input, shape index: {}]   ;;  %s1502_s15 = inlined_call_operand.vmem [shape: f32[1,24], index: 15, kind: input, shape index: {}]   ;;  %s1503_s2 = inlined_call_operand.vmem [shape: bf16[16,24], index: 2, kind: input, shape index: {}]   ;;  %s1504_s16 = inlined_call_operand.vmem [shape: f32[1,4], index: 16, kind: input, shape index: {}]   ;;  %s1505_s17 = inlined_call_operand.vmem [shape: f32[1,24], index: 17, kind: input, shape index: {}]   ;;  %s1506_s5 = inlined_call_operand.vmem [shape: bf16[64,64], index: 5, kind: input, shape index: {}]   ;;  %s1507_s22 = inlined_call_operand.<no memory space> [shape: f32[1,1], index: 22, kind: input, shape index: {}]   ;;  %s1508_s12 = inlined_call_operand.vmem [shape: f32[1,64], index: 12, kind: input, shape index: {}]   ;;  %s1509_s20 = inlined_call_operand.vmem [shape: f32[1,64], index: 20, kind: input, shape index: {}]   ;;  %s1510_s7 = inlined_call_operand.vmem [shape: bf16[64,64], index: 7, kind: input, shape index: {}]   ;;  %s1511_s13 = inlined_call_operand.vmem [shape: f32[1,64], index: 13, kind: input, shape index: {}]   ;;  %s1512_s21 = inlined_call_operand.vmem [shape: f32[1,64], index: 21, kind: input, shape index: {}]   ;;  %s1513_s6 = inlined_call_operand.vmem [shape: f32[1,64], index: 6, kind: input, shape index: {}]   ;;  %s1514_s18 = inlined_call_operand.vmem [shape: f32[1,64], index: 18, kind: input, shape index: {}]   ;;  %s1515_s8 = inlined_call_operand.vmem [shape: f32[1,64], index: 8, kind: input, shape index: {}]   ;;  %s1516_s19 = inlined_call_operand.vmem [shape: f32[1,64], index: 19, kind: input, shape index: {}]   ;;  %s1517_s23 = inlined_call_operand.vmem [shape: f32[16,1], index: 23, kind: output, shape index: {}]  }
   0x1   :  { %1524 = sst [smem:[#allocation3_spill]] %s1494_s10  ;;  %984 = vmatprep.subr.bf16.mxu0 %v1114_v0  ;;  %996 = vmatprep.subr.bf16.mxu1 %v1114_v0  ;;  %v1297_v20 = vld [vmem:[%s1502_s15] ss:$0 sm:$0xff]  ;;  %vm362_vm3 = vcmask 523264   ;;  %vm890_vm8 = vcmask 7168  }
   0x2   :  { %1525 = sst [smem:[#allocation4_spill]] %s1495_s9  ;;  %s1532_s24 = sld [smem:[#allocation3_spill]]  ;;  %992 = vmatprep.mubr.msk.bf16.mxu0 %vm1115_vm2, %v1114_v0  ;;  %1004 = vmatprep.mubr.msk.bf16.mxu1 %vm1115_vm2, %v1114_v0  ;;  %v1313_v29 = vld [vmem:[%s1503_s2] sm:$0xff]  }
   0x3   :  { %1526 = sst [smem:[#allocation5_spill]] %s1496_s4  ;;  %s1533_s9 = sld [smem:[#allocation4_spill]]  ;;  %v900_v55 = vld [vmem:[%s1504_s16] ss:$0 sm:$0xff]  ;;  %v147_v61 = vunpack.c.l.bf16 %v1313_v29 }
   0x4   :  { %1527 = sst [smem:[#allocation6_spill]] %s1497_s3  ;;  %s1538_s27 = sld [smem:[#allocation5_spill]]  ;;  %v901_v62 = vld [vmem:[%s1505_s17] ss:$0 sm:$0xff] }
   0x5   :  { %1528 = sst [smem:[#allocation7_spill]] %s1498_s1 }
   0x6   :  { %1529 = sst [smem:[#allocation8_spill]] %s1499_s0  ;;  %s1534_s30 = sld [smem:[#allocation7_spill]] }
   0x7   :  { %1530 = sst [smem:[#allocation9_spill]] %s1500_s11  ;;  %s1535_s26 = sld [smem:[#allocation8_spill]] }
   0x8   :  { %1531 = sst [smem:[#allocation10_spill]] %s1501_s14  ;;  %v1074_v1 = vld [vmem:[%s1532_s24] sm:$0xff]   ;;  %v1076_v5 = vld [vmem:[%s1532_s24 + $0x8] sm:$0xff]   ;;  %v1078_v9 = vld [vmem:[%s1532_s24 + $0x10] sm:$0xff]   ;;  %s1539_s0 = sld [smem:[#allocation6_spill]] }
   0x9   :  { %v1075_v2 = vld [vmem:[%s1533_s9] sm:$0xff]   ;;  %v210_v3 = vsel %vm120_vm0, %v1074_v1, 0  ;;  %v1077_v6 = vld [vmem:[%s1533_s9 + $0x8] sm:$0xff]   ;;  %v213_v7 = vsel %vm120_vm0, %v1076_v5, 0  ;;  %v1079_v10 = vld [vmem:[%s1533_s9 + $0x10] sm:$0xff]   ;;  %v216_v11 = vsel %vm120_vm0, %v1078_v9, 0 }
   0xa   :  { %985 = vmatpush3.bf16.xpose.msra.mxu0 %v210_v3  ;;  %v286_v4 = vsel %vm94_vm1, %v1075_v2, 0  ;;  %v289_v8 = vsel %vm94_vm1, %v1077_v6, 0  ;;  %v292_v13 = vsel %vm94_vm1, %v1079_v10, 0  ;;  %s1536_s28 = sld [smem:[#allocation10_spill]]  ;;  %v1080_v18 = vld [vmem:[%s1532_s24 + $0x18] sm:$0xff]   ;;  %v1083_v31 = vld [vmem:[%s1538_s27] sm:$0xff]   ;;  %v155_v2 = vmul.f32 %v901_v62, %v147_v61 }
   0xb   :  { %997 = vmatpush3.bf16.xpose.msra.mxu1 %v286_v4  ;;  %986 = vmatprep.subr.bf16.mxu0 %v1114_v0  ;;  %v1081_v22 = vld [vmem:[%s1533_s9 + $0x18] sm:$0xff]   ;;  %v219_v26 = vsel %vm120_vm0, %v1080_v18, 0  ;;  %v531_v34 = vsel %vm120_vm0, %v1083_v31, 0  ;;  %v1084_v36 = vld [vmem:[%s1538_s27 + $0x8] sm:$0xff]   ;;  %v1085_v40 = vld [vmem:[%s1538_s27 + $0x10] sm:$0xff]   ;;  %v148_v3 = vunpack.c.h.bf16 %v1313_v29 }
   0xc   :  { %998 = vmatprep.subr.bf16.mxu1 %v1114_v0  ;;  %v1272_v12 = vld [vmem:[%s1534_s30] sm:$0xff]   ;;  %v295_v28 = vsel %vm94_vm1, %v1081_v22, 0  ;;  %v534_v38 = vsel %vm120_vm0, %v1084_v36, 0  ;;  %v537_v42 = vsel %vm120_vm0, %v1085_v40, 0  ;;  %v1086_v43 = vld [vmem:[%s1538_s27 + $0x18] sm:$0xff]   ;;  %v157_v4 = vsel %vm120_vm0, %v155_v2, 0.0 }
   0xd   :  { %v110_v14 = vunpack.c.l.bf16 %v1272_v12  ;;  %v1279_v15 = vld [vmem:[%s1535_s26] sm:$0xff]  ;;  %v1284_v16 = vld [vmem:[%s1535_s26 + $0x8] sm:$0xff]  ;;  %s1537_s26 = sld [smem:[#allocation9_spill]]  ;;  %v540_v44 = vsel %vm120_vm0, %v1086_v43, 0  ;;  %v111_v53 = vunpack.c.h.bf16 %v1272_v12  ;;  %v156_v5 = vmul.f32 %v901_v62, %v148_v3 }
   0xe   :  { %v79_v32 = vpack.c.bf16 %v1284_v16, %v1279_v15  ;;  %v1088_v45 = vld [vmem:[%s1539_s0] sm:$0xff]   ;;  %v1089_v47 = vld [vmem:[%s1539_s0 + $0x8] sm:$0xff]   ;;  %v1090_v49 = vld [vmem:[%s1539_s0 + $0x10] sm:$0xff]   ;;  %v136_v57 = vmul.f32 %v900_v55, %v1279_v15  ;;  %v137_v60 = vmul.f32 %v900_v55, %v1284_v16 }
   0xf   :  { %v118_v23 = vmul.f32 %v1297_v20, %v110_v14  ;;  %v604_v46 = vsel %vm94_vm1, %v1088_v45, 0  ;;  %v607_v48 = vsel %vm94_vm1, %v1089_v47, 0  ;;  %v610_v50 = vsel %vm94_vm1, %v1090_v49, 0  ;;  %v1091_v51 = vld [vmem:[%s1539_s0 + $0x18] sm:$0xff]   ;;  %v913_v10 = vld [vmem:[%s1508_s12] ss:$0 sm:$0xff] }
  0x10   :  { %v897_v17 = vld [vmem:[%s1536_s28] ss:$0 sm:$0xff]  ;;  %v613_v52 = vsel %vm94_vm1, %v1091_v51, 0  ;;  %v119_v54 = vmul.f32 %v1297_v20, %v111_v53  ;;  %v138_v58 = vsel %vm94_vm1, %v136_v57, 0.0  ;;  %v141_v1 = vsel %vm94_vm1, %v137_v60, 0.0 }
  0x11   :  { %v92_v19 = vmul.f32 %v897_v17, %v1279_v15  ;;  %v93_v21 = vmul.f32 %v897_v17, %v1284_v16  ;;  %v121_v25 = vsel %vm120_vm0, %v118_v23, 0.0  ;;  %v160_v6 = vsel %vm120_vm0, %v156_v5, 0.0  ;;  %v914_v22 = vld [vmem:[%s1509_s20] ss:$0 sm:$0xff] }
  0x12   :  { %987 = vmatpush3.bf16.xpose.msra.mxu0 %v213_v7  ;;  %122 = vadd.xlane.f32.xlu1 %v121_v25  ;;  %v124_v56 = vsel %vm120_vm0, %v119_v54, 0.0  ;;  %v28_v7 = vstv %s1507_s22  ;;  %v1096_v23 = vld [vmem:[%s1506_s5] sm:$0xff]  }
  0x13   :  { %999 = vmatpush3.bf16.xpose.msra.mxu1 %v289_v8  ;;  %988 = vmatprep.subr.bf16.mxu0 %v1114_v0  ;;  %v95_v24 = vsel %vm94_vm1, %v92_v19, 0.0  ;;  %v98_v27 = vsel %vm94_vm1, %v93_v21, 0.0  ;;  %v1092_v30 = vld [vmem:[%s1537_s26] sm:$0xff]   ;;  %v1093_v35 = vld [vmem:[%s1537_s26 + $0x8] sm:$0xff]   ;;  %v1094_v39 = vld [vmem:[%s1537_s26 + $0x10] sm:$0xff]   ;;  %v698_v31 = vsel %vm362_vm3, %v1096_v23, 0 }
  0x14   :  { %1000 = vmatprep.subr.bf16.mxu1 %v1114_v0  ;;  %96 = vadd.xlane.f32.xlu0 %v95_v24  ;;  %v411_v33 = vsel %vm362_vm3, %v1092_v30, 0  ;;  %v414_v37 = vsel %vm362_vm3, %v1093_v35, 0  ;;  %v417_v41 = vsel %vm362_vm3, %v1094_v39, 0  ;;  %v1095_v59 = vld [vmem:[%s1537_s26 + $0x18] sm:$0xff]   ;;  %29 = vst [vmem:[#allocation2] sm:$0x1] %v28_v7 }
  0x15   :  { %v420_v63 = vsel %vm362_vm3, %v1095_v59, 0  ;;  %v1098_v35 = vld [vmem:[%s1506_s5 + $0x10] sm:$0xff]   ;;  %v915_v54 = vld [vmem:[%s1511_s13] ss:$0 sm:$0xff] }
  0x16   :  { %125 = vadd.xlane.f32.xlu1 %v124_v56  ;;  %v704_v36 = vsel %vm362_vm3, %v1098_v35, 0  ;;  %v946_v23 = vld [vmem:[%s1516_s19] ss:$0 sm:$0xff] }
  0x18   :  { %99 = vadd.xlane.f32.xlu0 %v98_v27 }
  0x1a   :  { %989 = vmatpush3.bf16.xpose.msra.mxu0 %v216_v11  ;;  %142 = vadd.xlane.f32.xlu1 %v141_v1 }
  0x1b   :  { %1001 = vmatpush3.bf16.xpose.msra.mxu1 %v292_v13  ;;  %990 = vmatprep.subr.bf16.mxu0 %v1114_v0 }
  0x1c   :  { %1002 = vmatprep.subr.bf16.mxu1 %v1114_v0  ;;  %139 = vadd.xlane.f32.xlu0 %v138_v58 }
  0x1e   :  { %161 = vadd.xlane.f32.xlu1 %v160_v6  ;;  %v933_v6 = vld [vmem:[%s1513_s6] ss:$0 sm:$0xff] }
  0x20   :  { %158 = vadd.xlane.f32.xlu0 %v157_v4 }
  0x22   :  { %991 = vmatpush3.bf16.xpose.msra.mxu0 %v219_v26 }
  0x23   :  { %1003 = vmatpush3.bf16.xpose.msra.mxu1 %v295_v28  ;;  %1008 = vmatprep.subr.bf16.mxu0 %v1114_v0 }
  0x24   :  { %1020 = vmatprep.subr.bf16.mxu1 %v1114_v0 }
  0x29   :  { %993 = vmatmul.mubr.msk.bf16.vlgmr.msra.gmra.mrb[0].mxu0 %vm120_vm0, %v1313_v29 }
  0x2a   :  { %1005 = vmatmul.mubr.msk.bf16.vlgmr.msra.gmra.mrb[0].mxu1 %vm94_vm1, %v79_v32  ;;  %1009 = vmatpush3.bf16.xpose.msra.mxu0 %v411_v33  ;;  %v1097_v33 = vld [vmem:[%s1506_s5 + $0x8] sm:$0xff]  }
  0x2b   :  { %1021 = vmatpush3.bf16.xpose.msra.mxu1 %v531_v34  ;;  %1028 = vmatprep.mubr.msk.bf16.mxu1 %vm1115_vm2, %v1114_v0  ;;  %v701_v34 = vsel %vm362_vm3, %v1097_v33, 0 }
  0x2c   :  { %1022 = vmatprep.subr.bf16.mxu1 %v1114_v0  ;;  %1010 = vmatprep.subr.bf16.mxu0 %v1114_v0 }
  0x2d   :  { %1016 = vmatprep.mubr.msk.bf16.mxu0 %vm1115_vm2, %v1114_v0 }
  0x32   :  { %1011 = vmatpush3.bf16.xpose.msra.mxu0 %v414_v37  ;;  %v1099_v37 = vld [vmem:[%s1506_s5 + $0x18] sm:$0xff]  }
  0x33   :  { %1023 = vmatpush3.bf16.xpose.msra.mxu1 %v534_v38  ;;  %1012 = vmatprep.subr.bf16.mxu0 %v1114_v0  ;;  %v707_v38 = vsel %vm362_vm3, %v1099_v37, 0  ;;  %v898_v37 = vld [vmem:[#allocation2] ss:$0 sm:$0xff] }
  0x34   :  { %1024 = vmatprep.subr.bf16.mxu1 %v1114_v0 }
  0x3a   :  { %1013 = vmatpush3.bf16.xpose.msra.mxu0 %v417_v41 }
  0x3b   :  { %1025 = vmatpush3.bf16.xpose.msra.mxu1 %v537_v42  ;;  %1014 = vmatprep.subr.bf16.mxu0 %v1114_v0 }
  0x3c   :  { %1026 = vmatprep.subr.bf16.mxu1 %v1114_v0 }
  0x42   :  { %1015 = vmatpush3.bf16.xpose.msra.mxu0 %v420_v63 }
  0x43   :  { %1027 = vmatpush3.bf16.xpose.msra.mxu1 %v540_v44  ;;  %1044 = vmatprep.subr.bf16.mxu0 %v1114_v0 }
  0x44   :  { %1032 = vmatprep.subr.bf16.mxu1 %v1114_v0 }
  0x4a   :  { %1029 = vmatmul.mubr.msk.bf16.vlgmr.msra.gmra.mrb[4].mxu1 %vm120_vm0, %v1272_v12 }
  0x4b   :  { %1033 = vmatpush3.bf16.xpose.msra.mxu1 %v604_v46  ;;  %1040 = vmatprep.mubr.msk.bf16.mxu1 %vm1115_vm2, %v1114_v0  ;;  %v1100_v46 = vld [vmem:[%s1510_s7] sm:$0xff]  }
  0x4c   :  { %1034 = vmatprep.subr.bf16.mxu1 %v1114_v0  ;;  %v809_v47 = vsel %vm362_vm3, %v1100_v46, 0 }
  0x53   :  { %1035 = vmatpush3.bf16.xpose.msra.mxu1 %v607_v48  ;;  %v1101_v48 = vld [vmem:[%s1510_s7 + $0x8] sm:$0xff]  }
  0x54   :  { %1036 = vmatprep.subr.bf16.mxu1 %v1114_v0  ;;  %v812_v49 = vsel %vm362_vm3, %v1101_v48, 0 }
  0x5b   :  { %1037 = vmatpush3.bf16.xpose.msra.mxu1 %v610_v50  ;;  %v1102_v50 = vld [vmem:[%s1510_s7 + $0x10] sm:$0xff]  }
  0x5c   :  { %1038 = vmatprep.subr.bf16.mxu1 %v1114_v0  ;;  %v815_v51 = vsel %vm362_vm3, %v1102_v50, 0 }
  0x63   :  { %1039 = vmatpush3.bf16.xpose.msra.mxu1 %v613_v52  ;;  %v1103_v52 = vld [vmem:[%s1510_s7 + $0x18] sm:$0xff]  }
  0x64   :  { %v818_v53 = vsel %vm362_vm3, %v1103_v52, 0 }
  0x6a   :  { %1041 = vmatmul.mubr.msk.bf16.vlgmr.msra.gmra.mrb[4].mxu1 %vm94_vm1, %v79_v32 }
  0xa1   :  { %v97_v33 = vpop.xlane.xlu0 %96 }
  0xa5   :  { %v100_v35 = vpop.xlane.xlu0 %99 }
  0xfc   :  { %v255_v8 = vpop.f32.mrb[0].mxu0 }
  0xfd   :  { %v331_v9 = vpop.f32.mrb[0].mxu1  ;;  %v994_v11 = vpop.f32.mrb[1].mxu0 }
  0xfe   :  { %v332_v12 = vadd.f32 %v331_v9, %v255_v8  ;;  %v1006_v13 = vpop.f32.mrb[1].mxu1  ;;  %v258_v14 = vpop.f32.mrb[2].mxu0  ;;  %v939_v8 = vld [vmem:[%s1514_s18] ss:$0 sm:$0xff] }
  0xff   :  { %v334_v15 = vpop.f32.mrb[2].mxu1  ;;  %v995_v16 = vpop.f32.mrb[3].mxu0 }
 0x100   :  { %v345_v17 = vadd.f32 %v913_v10, %v332_v12  ;;  %v335_v18 = vadd.f32 %v334_v15, %v258_v14  ;;  %v1007_v19 = vpop.f32.mrb[3].mxu1 }
 0x102   :  { %v349_v20 = vmul.f32 0.01, %v345_v17  ;;  %v346_v21 = vadd.f32 %v913_v10, %v335_v18  ;;  %vm347_vm4 = vcmp.ge.f32.partialorder %v345_v17, 0.0 }
 0x104   :  { %vm348_vm5 = vcmp.ge.f32.partialorder %v346_v21, 0.0  ;;  %v350_v24 = vmul.f32 0.01, %v346_v21  ;;  %v351_v25 = vsel %vm347_vm4, %v345_v17, %v349_v20 }
 0x105   :  { %v360_v26 = vmul.f32 %v914_v22, %v351_v25 }
 0x106   :  { %v352_v27 = vsel %vm348_vm5, %v346_v21, %v350_v24  ;;  %v940_v21 = vld [vmem:[%s1515_s8] ss:$0 sm:$0xff] }
 0x107   :  { %v363_v28 = vsel %vm362_vm3, %v360_v26, 0.0  ;;  %v371_v29 = vpack.c.bf16 %v352_v27, %v351_v25  ;;  %v361_v30 = vmul.f32 %v914_v22, %v352_v27 }
 0x108   :  { %364 = vadd.xlane.f32.xlu0 %v363_v28 }
 0x109   :  { %1017 = vmatmul.mubr.msk.bf16.vlgmr.msra.gmra.mrb[4].mxu0 %vm362_vm3, %v371_v29  ;;  %v366_v32 = vsel %vm362_vm3, %v361_v30, 0.0 }
 0x10a   :  { %367 = vadd.xlane.f32.xlu1 %v366_v32  ;;  %1045 = vmatpush3.bf16.xpose.msra.mxu0 %v698_v31 }
 0x10b   :  { %1046 = vmatprep.subr.bf16.mxu0 %v1114_v0  ;;  %1052 = vmatprep.mubr.msk.bf16.mxu0 %vm1115_vm2, %v1114_v0 }
 0x112   :  { %1047 = vmatpush3.bf16.xpose.msra.mxu0 %v701_v34  ;;  %v123_v34 = vpop.xlane.xlu1 %122 }
 0x113   :  { %1048 = vmatprep.subr.bf16.mxu0 %v1114_v0 }
 0x11a   :  { %1049 = vmatpush3.bf16.xpose.msra.mxu0 %v704_v36  ;;  %v126_v36 = vpop.xlane.xlu1 %125 }
 0x11b   :  { %1050 = vmatprep.subr.bf16.mxu0 %v1114_v0 }
 0x122   :  { %1051 = vmatpush3.bf16.xpose.msra.mxu0 %v707_v38  ;;  %v140_v38 = vpop.xlane.xlu0 %139 }
 0x123   :  { %1056 = vmatprep.subr.bf16.mxu0 %v1114_v0 }
 0x13d   :  { %v649_v39 = vpop.f32.mrb[4].mxu1 }
 0x13e   :  { %v1042_v40 = vpop.f32.mrb[5].mxu1  ;;  %v656_v42 = vmul.f32 %v649_v39, %v649_v39 }
 0x13f   :  { %v652_v41 = vpop.f32.mrb[6].mxu1  ;;  %v107_v40 = vadd.f32 %v898_v37, %v97_v33 }
 0x140   :  { %v657_v43 = vmul.f32 %v652_v41, %v652_v41  ;;  %v1043_v44 = vpop.f32.mrb[7].mxu1 }
 0x142   :  { %v658_v45 = vpack.c.bf16 %v657_v43, %v656_v42  ;;  %v159_v42 = vpop.xlane.xlu0 %158  ;;  %v127_v43 = vadd.f32 %v123_v34, %v107_v40 }
 0x144   :  { %1053 = vmatmul.mubr.msk.bf16.vlgmr.msra.gmra.mrb[8].mxu0 %vm362_vm3, %v658_v45  ;;  %v144_v46 = vadd.f32 %v140_v38, %v127_v43 }
 0x145   :  { %1064 = vmatprep.mubr.msk.bf16.mxu0 %vm1115_vm2, %v1114_v0  ;;  %1057 = vmatpush3.bf16.xpose.msra.mxu0 %v809_v47 }
 0x146   :  { %1058 = vmatprep.subr.bf16.mxu0 %v1114_v0  ;;  %v163_v50 = vadd.f32 %v159_v42, %v144_v46 }
 0x14d   :  { %1059 = vmatpush3.bf16.xpose.msra.mxu0 %v812_v49 }
 0x14e   :  { %1060 = vmatprep.subr.bf16.mxu0 %v1114_v0 }
 0x155   :  { %1061 = vmatpush3.bf16.xpose.msra.mxu0 %v815_v51 }
 0x156   :  { %1062 = vmatprep.subr.bf16.mxu0 %v1114_v0  ;;  %v921_v0 = vld [vmem:[%s1512_s21] ss:$0 sm:$0xff] }
 0x15d   :  { %1063 = vmatpush3.bf16.xpose.msra.mxu0 %v818_v53 }
 0x195   :  { %v365_v47 = vpop.xlane.xlu0 %364 }
 0x1dc   :  { %v456_v55 = vpop.f32.mrb[4].mxu0 }
 0x1dd   :  { %v457_v56 = vadd.f32 %v915_v54, %v456_v55  ;;  %v1018_v57 = vpop.f32.mrb[5].mxu0 }
 0x1de   :  { %v459_v58 = vpop.f32.mrb[6].mxu0 }
 0x1df   :  { %vm463_vm6 = vcmp.ge.f32.partialorder %v457_v56, 0.0  ;;  %v465_v59 = vmul.f32 0.01, %v457_v56  ;;  %v460_v60 = vadd.f32 %v915_v54, %v459_v58  ;;  %v1019_v61 = vpop.f32.mrb[7].mxu0  ;;  %v369_v54 = vadd.f32 %v365_v47, %v163_v50 }
 0x1e1   :  { %vm464_vm7 = vcmp.ge.f32.partialorder %v460_v60, 0.0  ;;  %v466_v62 = vmul.f32 0.01, %v460_v60  ;;  %v467_v63 = vsel %vm463_vm6, %v457_v56, %v465_v59 }
 0x1e2   :  { %v476_v1 = vmul.f32 %v921_v0, %v467_v63 }
 0x1e3   :  { %v468_v2 = vsel %vm464_vm7, %v460_v60, %v466_v62 }
 0x1e4   :  { %v478_v3 = vsel %vm362_vm3, %v476_v1, 0.0  ;;  %v477_v4 = vmul.f32 %v921_v0, %v468_v2 }
 0x1e5   :  { %479 = vadd.xlane.f32.xlu0 %v478_v3 }
 0x1e6   :  { %v481_v5 = vsel %vm362_vm3, %v477_v4, 0.0 }
 0x1e7   :  { %482 = vadd.xlane.f32.xlu1 %v481_v5 }
 0x217   :  { %v743_v7 = vpop.f32.mrb[8].mxu0 }
 0x218   :  { %v744_v9 = vadd.f32 %v933_v6, %v743_v7  ;;  %v1054_v10 = vpop.f32.mrb[9].mxu0 }
 0x219   :  { %v746_v11 = vpop.f32.mrb[10].mxu0 }
 0x21a   :  { %v767_v12 = vmul.f32 %v744_v9, %v649_v39  ;;  %v747_v13 = vadd.f32 %v933_v6, %v746_v11  ;;  %v1055_v14 = vpop.f32.mrb[11].mxu0  ;;  %v757_v15 = vmul.f32 %v939_v8, %v744_v9  ;;  %v143_v39 = vpop.xlane.xlu1 %142 }
 0x21c   :  { %v768_v16 = vmul.f32 %v747_v13, %v652_v41  ;;  %v759_v17 = vsel %vm362_vm3, %v757_v15, 0.0  ;;  %v758_v18 = vmul.f32 %v939_v8, %v747_v13  ;;  %v108_v41 = vadd.f32 %v898_v37, %v100_v35 }
 0x21d   :  { %760 = vadd.xlane.f32.xlu0 %v759_v17 }
 0x21e   :  { %v769_v19 = vpack.c.bf16 %v768_v16, %v767_v12  ;;  %v762_v20 = vsel %vm362_vm3, %v758_v18, 0.0  ;;  %v162_v44 = vpop.xlane.xlu1 %161  ;;  %v128_v45 = vadd.f32 %v126_v36, %v108_v41 }
 0x21f   :  { %763 = vadd.xlane.f32.xlu1 %v762_v20 }
 0x220   :  { %1065 = vmatmul.mubr.msk.bf16.vlgmr.msra.gmra.mrb[12].mxu0 %vm362_vm3, %v769_v19  ;;  %v145_v48 = vadd.f32 %v143_v39, %v128_v45 }
 0x222   :  { %v368_v49 = vpop.xlane.xlu1 %367  ;;  %v164_v52 = vadd.f32 %v162_v44, %v145_v48 }
 0x224   :  { %v370_v56 = vadd.f32 %v368_v49, %v164_v52 }
 0x272   :  { %v480_v51 = vpop.xlane.xlu0 %479 }
 0x273   :  { %v484_v57 = vadd.f32 %v480_v51, %v369_v54 }
 0x274   :  { %v483_v53 = vpop.xlane.xlu1 %482 }
 0x275   :  { %v485_v59 = vadd.f32 %v483_v53, %v370_v56 }
 0x2aa   :  { %v761_v55 = vpop.xlane.xlu0 %760 }
 0x2ab   :  { %v765_v60 = vadd.f32 %v761_v55, %v484_v57 }
 0x2ac   :  { %v764_v58 = vpop.xlane.xlu1 %763 }
 0x2ad   :  { %v766_v0 = vadd.f32 %v764_v58, %v485_v59 }
 0x2f3   :  { %v854_v22 = vpop.f32.mrb[12].mxu0 }
 0x2f4   :  { %v855_v24 = vadd.f32 %v940_v21, %v854_v22  ;;  %v1066_v25 = vpop.f32.mrb[13].mxu0 }
 0x2f5   :  { %v857_v26 = vpop.f32.mrb[14].mxu0 }
 0x2f6   :  { %v858_v27 = vadd.f32 %v940_v21, %v857_v26  ;;  %v1067_v28 = vpop.f32.mrb[15].mxu0  ;;  %v868_v29 = vmul.f32 %v946_v23, %v855_v24 }
 0x2f8   :  { %v870_v30 = vsel %vm362_vm3, %v868_v29, 0.0  ;;  %v869_v31 = vmul.f32 %v946_v23, %v858_v27 }
 0x2f9   :  { %871 = vadd.xlane.f32.xlu0 %v870_v30 }
 0x2fa   :  { %v873_v32 = vsel %vm362_vm3, %v869_v31, 0.0 }
 0x2fb   :  { %874 = vadd.xlane.f32.xlu1 %v873_v32 }
 0x386   :  { %v872_v61 = vpop.xlane.xlu0 %871 }
 0x387   :  { %v876_v62 = vadd.f32 %v872_v61, %v765_v60 }
 0x388   :  { %v875_v63 = vpop.xlane.xlu1 %874 }
 0x389   :  { %v947_v1 = vmul.f32 -1.442695, %v876_v62  ;;  %v877_v2 = vadd.f32 %v875_v63, %v766_v0 }
 0x38b   :  { %1106 = vpow2.f32 %v947_v1  ;;  %v948_v3 = vmul.f32 -1.442695, %v877_v2 }
 0x38d   :  { %1108 = vpow2.f32 %v948_v3 }
 0x395   :  { %v1107_v4 = vpop.eup %1106 }
 0x396   :  { %v884_v5 = vadd.f32 1.0, %v1107_v4 }
 0x397   :  { %v1109_v6 = vpop.eup %1108 }
 0x398   :  { %1110 = vrcp.f32 %v884_v5  ;;  %v885_v7 = vadd.f32 1.0, %v1109_v6 }
 0x39a   :  { %1112 = vrcp.f32 %v885_v7 }
 0x3a2   :  { %v1111_v8 = vpop.eup %1110 }
 0x3a3   :  { %891 = vst.msk [vmem:[%s1517_s23] sm:$0xff] %vm890_vm8, %v1111_v8 }
 0x3a4   :  { %v1113_v9 = vpop.eup %1112 }
 0x3a5   :  { %892 = vst.msk [vmem:[%s1517_s23 + $0x8] sm:$0xff] %vm890_vm8, %v1113_v9 }

// kernel: tpu_custom_call.1
= control target key start
LH: loop header
LB: loop body
LE: loop exit
PB: predicated region body
PF: predicated region fallthrough
CT: control target
= control target key end

     0   :  { %vm120_vm0 = vcmask 195584   ;;  %v1114_v0 = vmov 0.0   ;;  %vm94_vm1 = vcmask 31744   ;;  %vm1115_vm2 = vmmov 0   ;;  %s1494_s10 = inlined_call_operand.vmem [shape: bf16[64,24], index: 10, kind: input, shape index: {}]   ;;  %s1495_s9 = inlined_call_operand.vmem [shape: bf16[64,4], index: 9, kind: input, shape index: {}]   ;;  %s1496_s4 = inlined_call_operand.vmem [shape: bf16[64,24], index: 4, kind: input, shape index: {}]   ;;  %s1497_s3 = inlined_call_operand.vmem [shape: bf16[64,4], index: 3, kind: input, shape index: {}]   ;;  %s1498_s1 = inlined_call_operand.vmem [shape: bf16[16,24], index: 1, kind: input, shape index: {}]   ;;  %s1499_s0 = inlined_call_operand.vmem [shape: f32[16,4], index: 0, kind: input, shape index: {}]   ;;  %s1500_s11 = inlined_call_operand.vmem [shape: bf16[64,64], index: 11, kind: input, shape index: {}]   ;;  %s1501_s14 = inlined_call_operand.vmem [shape: f32[1,4], index: 14, kind: input, shape index: {}]   ;;  %s1502_s15 = inlined_call_operand.vmem [shape: f32[1,24], index: 15, kind: input, shape index: {}]   ;;  %s1503_s2 = inlined_call_operand.vmem [shape: bf16[16,24], index: 2, kind: input, shape index: {}]   ;;  %s1504_s16 = inlined_call_operand.vmem [shape: f32[1,4], index: 16, kind: input, shape index: {}]   ;;  %s1505_s17 = inlined_call_operand.vmem [shape: f32[1,24], index: 17, kind: input, shape index: {}]   ;;  %s1506_s5 = inlined_call_operand.vmem [shape: bf16[64,64], index: 5, kind: input, shape index: {}]   ;;  %s1507_s22 = inlined_call_operand.<no memory space> [shape: f32[1,1], index: 22, kind: input, shape index: {}]   ;;  %s1508_s12 = inlined_call_operand.vmem [shape: f32[1,64], index: 12, kind: input, shape index: {}]   ;;  %s1509_s20 = inlined_call_operand.vmem [shape: f32[1,64], index: 20, kind: input, shape index: {}]   ;;  %s1510_s7 = inlined_call_operand.vmem [shape: bf16[64,64], index: 7, kind: input, shape index: {}]   ;;  %s1511_s13 = inlined_call_operand.vmem [shape: f32[1,64], index: 13, kind: input, shape index: {}]   ;;  %s1512_s21 = inlined_call_operand.vmem [shape: f32[1,64], index: 21, kind: input, shape index: {}]   ;;  %s1513_s6 = inlined_call_operand.vmem [shape: f32[1,64], index: 6, kind: input, shape index: {}]   ;;  %s1514_s18 = inlined_call_operand.vmem [shape: f32[1,64], index: 18, kind: input, shape index: {}]   ;;  %s1515_s8 = inlined_call_operand.vmem [shape: f32[1,64], index: 8, kind: input, shape index: {}]   ;;  %s1516_s19 = inlined_call_operand.vmem [shape: f32[1,64], index: 19, kind: input, shape index: {}]   ;;  %s1517_s23 = inlined_call_operand.vmem [shape: f32[16,1], index: 23, kind: output, shape index: {}]  }
   0x1   :  { %1524 = sst [smem:[#allocation3_spill]] %s1494_s10  ;;  %984 = vmatprep.subr.bf16.mxu0 %v1114_v0  ;;  %996 = vmatprep.subr.bf16.mxu1 %v1114_v0  ;;  %v1297_v20 = vld [vmem:[%s1502_s15] ss:$0 sm:$0xff]  ;;  %vm362_vm3 = vcmask 523264   ;;  %vm890_vm8 = vcmask 7168  }
   0x2   :  { %1525 = sst [smem:[#allocation4_spill]] %s1495_s9  ;;  %s1532_s24 = sld [smem:[#allocation3_spill]]  ;;  %992 = vmatprep.mubr.msk.bf16.mxu0 %vm1115_vm2, %v1114_v0  ;;  %1004 = vmatprep.mubr.msk.bf16.mxu1 %vm1115_vm2, %v1114_v0  ;;  %v1313_v29 = vld [vmem:[%s1503_s2] sm:$0xff]  }
   0x3   :  { %1526 = sst [smem:[#allocation5_spill]] %s1496_s4  ;;  %s1533_s9 = sld [smem:[#allocation4_spill]]  ;;  %v900_v55 = vld [vmem:[%s1504_s16] ss:$0 sm:$0xff]  ;;  %v147_v61 = vunpack.c.l.bf16 %v1313_v29 }
   0x4   :  { %1527 = sst [smem:[#allocation6_spill]] %s1497_s3  ;;  %s1538_s27 = sld [smem:[#allocation5_spill]]  ;;  %v901_v62 = vld [vmem:[%s1505_s17] ss:$0 sm:$0xff] }
   0x5   :  { %1528 = sst [smem:[#allocation7_spill]] %s1498_s1 }
   0x6   :  { %1529 = sst [smem:[#allocation8_spill]] %s1499_s0  ;;  %s1534_s30 = sld [smem:[#allocation7_spill]] }
   0x7   :  { %1530 = sst [smem:[#allocation9_spill]] %s1500_s11  ;;  %s1535_s26 = sld [smem:[#allocation8_spill]] }
   0x8   :  { %1531 = sst [smem:[#allocation10_spill]] %s1501_s14  ;;  %v1074_v1 = vld [vmem:[%s1532_s24] sm:$0xff]   ;;  %v1076_v5 = vld [vmem:[%s1532_s24 + $0x8] sm:$0xff]   ;;  %v1078_v9 = vld [vmem:[%s1532_s24 + $0x10] sm:$0xff]   ;;  %s1539_s0 = sld [smem:[#allocation6_spill]] }
   0x9   :  { %v1075_v2 = vld [vmem:[%s1533_s9] sm:$0xff]   ;;  %v210_v3 = vsel %vm120_vm0, %v1074_v1, 0  ;;  %v1077_v6 = vld [vmem:[%s1533_s9 + $0x8] sm:$0xff]   ;;  %v213_v7 = vsel %vm120_vm0, %v1076_v5, 0  ;;  %v1079_v10 = vld [vmem:[%s1533_s9 + $0x10] sm:$0xff]   ;;  %v216_v11 = vsel %vm120_vm0, %v1078_v9, 0 }
   0xa   :  { %985 = vmatpush3.bf16.xpose.msra.mxu0 %v210_v3  ;;  %v286_v4 = vsel %vm94_vm1, %v1075_v2, 0  ;;  %v289_v8 = vsel %vm94_vm1, %v1077_v6, 0  ;;  %v292_v13 = vsel %vm94_vm1, %v1079_v10, 0  ;;  %s1536_s28 = sld [smem:[#allocation10_spill]]  ;;  %v1080_v18 = vld [vmem:[%s1532_s24 + $0x18] sm:$0xff]   ;;  %v1083_v31 = vld [vmem:[%s1538_s27] sm:$0xff]   ;;  %v155_v2 = vmul.f32 %v901_v62, %v147_v61 }
   0xb   :  { %997 = vmatpush3.bf16.xpose.msra.mxu1 %v286_v4  ;;  %986 = vmatprep.subr.bf16.mxu0 %v1114_v0  ;;  %v1081_v22 = vld [vmem:[%s1533_s9 + $0x18] sm:$0xff]   ;;  %v219_v26 = vsel %vm120_vm0, %v1080_v18, 0  ;;  %v531_v34 = vsel %vm120_vm0, %v1083_v31, 0  ;;  %v1084_v36 = vld [vmem:[%s1538_s27 + $0x8] sm:$0xff]   ;;  %v1085_v40 = vld [vmem:[%s1538_s27 + $0x10] sm:$0xff]   ;;  %v148_v3 = vunpack.c.h.bf16 %v1313_v29 }
   0xc   :  { %998 = vmatprep.subr.bf16.mxu1 %v1114_v0  ;;  %v1272_v12 = vld [vmem:[%s1534_s30] sm:$0xff]   ;;  %v295_v28 = vsel %vm94_vm1, %v1081_v22, 0  ;;  %v534_v38 = vsel %vm120_vm0, %v1084_v36, 0  ;;  %v537_v42 = vsel %vm120_vm0, %v1085_v40, 0  ;;  %v1086_v43 = vld [vmem:[%s1538_s27 + $0x18] sm:$0xff]   ;;  %v157_v4 = vsel %vm120_vm0, %v155_v2, 0.0 }
   0xd   :  { %v110_v14 = vunpack.c.l.bf16 %v1272_v12  ;;  %v1279_v15 = vld [vmem:[%s1535_s26] sm:$0xff]  ;;  %v1284_v16 = vld [vmem:[%s1535_s26 + $0x8] sm:$0xff]  ;;  %s1537_s26 = sld [smem:[#allocation9_spill]]  ;;  %v540_v44 = vsel %vm120_vm0, %v1086_v43, 0  ;;  %v111_v53 = vunpack.c.h.bf16 %v1272_v12  ;;  %v156_v5 = vmul.f32 %v901_v62, %v148_v3 }
   0xe   :  { %v79_v32 = vpack.c.bf16 %v1284_v16, %v1279_v15  ;;  %v1088_v45 = vld [vmem:[%s1539_s0] sm:$0xff]   ;;  %v1089_v47 = vld [vmem:[%s1539_s0 + $0x8] sm:$0xff]   ;;  %v1090_v49 = vld [vmem:[%s1539_s0 + $0x10] sm:$0xff]   ;;  %v136_v57 = vmul.f32 %v900_v55, %v1279_v15  ;;  %v137_v60 = vmul.f32 %v900_v55, %v1284_v16 }
   0xf   :  { %v118_v23 = vmul.f32 %v1297_v20, %v110_v14  ;;  %v604_v46 = vsel %vm94_vm1, %v1088_v45, 0  ;;  %v607_v48 = vsel %vm94_vm1, %v1089_v47, 0  ;;  %v610_v50 = vsel %vm94_vm1, %v1090_v49, 0  ;;  %v1091_v51 = vld [vmem:[%s1539_s0 + $0x18] sm:$0xff]   ;;  %v913_v10 = vld [vmem:[%s1508_s12] ss:$0 sm:$0xff] }
  0x10   :  { %v897_v17 = vld [vmem:[%s1536_s28] ss:$0 sm:$0xff]  ;;  %v613_v52 = vsel %vm94_vm1, %v1091_v51, 0  ;;  %v119_v54 = vmul.f32 %v1297_v20, %v111_v53  ;;  %v138_v58 = vsel %vm94_vm1, %v136_v57, 0.0  ;;  %v141_v1 = vsel %vm94_vm1, %v137_v60, 0.0 }
  0x11   :  { %v92_v19 = vmul.f32 %v897_v17, %v1279_v15  ;;  %v93_v21 = vmul.f32 %v897_v17, %v1284_v16  ;;  %v121_v25 = vsel %vm120_vm0, %v118_v23, 0.0  ;;  %v160_v6 = vsel %vm120_vm0, %v156_v5, 0.0  ;;  %v914_v22 = vld [vmem:[%s1509_s20] ss:$0 sm:$0xff] }
  0x12   :  { %987 = vmatpush3.bf16.xpose.msra.mxu0 %v213_v7  ;;  %122 = vadd.xlane.f32.xlu1 %v121_v25  ;;  %v124_v56 = vsel %vm120_vm0, %v119_v54, 0.0  ;;  %v28_v7 = vstv %s1507_s22  ;;  %v1096_v23 = vld [vmem:[%s1506_s5] sm:$0xff]  }
  0x13   :  { %999 = vmatpush3.bf16.xpose.msra.mxu1 %v289_v8  ;;  %988 = vmatprep.subr.bf16.mxu0 %v1114_v0  ;;  %v95_v24 = vsel %vm94_vm1, %v92_v19, 0.0  ;;  %v98_v27 = vsel %vm94_vm1, %v93_v21, 0.0  ;;  %v1092_v30 = vld [vmem:[%s1537_s26] sm:$0xff]   ;;  %v1093_v35 = vld [vmem:[%s1537_s26 + $0x8] sm:$0xff]   ;;  %v1094_v39 = vld [vmem:[%s1537_s26 + $0x10] sm:$0xff]   ;;  %v698_v31 = vsel %vm362_vm3, %v1096_v23, 0 }
  0x14   :  { %1000 = vmatprep.subr.bf16.mxu1 %v1114_v0  ;;  %96 = vadd.xlane.f32.xlu0 %v95_v24  ;;  %v411_v33 = vsel %vm362_vm3, %v1092_v30, 0  ;;  %v414_v37 = vsel %vm362_vm3, %v1093_v35, 0  ;;  %v417_v41 = vsel %vm362_vm3, %v1094_v39, 0  ;;  %v1095_v59 = vld [vmem:[%s1537_s26 + $0x18] sm:$0xff]   ;;  %29 = vst [vmem:[#allocation2] sm:$0x1] %v28_v7 }
  0x15   :  { %v420_v63 = vsel %vm362_vm3, %v1095_v59, 0  ;;  %v1098_v35 = vld [vmem:[%s1506_s5 + $0x10] sm:$0xff]   ;;  %v915_v54 = vld [vmem:[%s1511_s13] ss:$0 sm:$0xff] }
  0x16   :  { %125 = vadd.xlane.f32.xlu1 %v124_v56  ;;  %v704_v36 = vsel %vm362_vm3, %v1098_v35, 0  ;;  %v946_v23 = vld [vmem:[%s1516_s19] ss:$0 sm:$0xff] }
  0x18   :  { %99 = vadd.xlane.f32.xlu0 %v98_v27 }
  0x1a   :  { %989 = vmatpush3.bf16.xpose.msra.mxu0 %v216_v11  ;;  %142 = vadd.xlane.f32.xlu1 %v141_v1 }
  0x1b   :  { %1001 = vmatpush3.bf16.xpose.msra.mxu1 %v292_v13  ;;  %990 = vmatprep.subr.bf16.mxu0 %v1114_v0 }
  0x1c   :  { %1002 = vmatprep.subr.bf16.mxu1 %v1114_v0  ;;  %139 = vadd.xlane.f32.xlu0 %v138_v58 }
  0x1e   :  { %161 = vadd.xlane.f32.xlu1 %v160_v6  ;;  %v933_v6 = vld [vmem:[%s1513_s6] ss:$0 sm:$0xff] }
  0x20   :  { %158 = vadd.xlane.f32.xlu0 %v157_v4 }
  0x22   :  { %991 = vmatpush3.bf16.xpose.msra.mxu0 %v219_v26 }
  0x23   :  { %1003 = vmatpush3.bf16.xpose.msra.mxu1 %v295_v28  ;;  %1008 = vmatprep.subr.bf16.mxu0 %v1114_v0 }
  0x24   :  { %1020 = vmatprep.subr.bf16.mxu1 %v1114_v0 }
  0x29   :  { %993 = vmatmul.mubr.msk.bf16.vlgmr.msra.gmra.mrb[0].mxu0 %vm120_vm0, %v1313_v29 }
  0x2a   :  { %1005 = vmatmul.mubr.msk.bf16.vlgmr.msra.gmra.mrb[0].mxu1 %vm94_vm1, %v79_v32  ;;  %1009 = vmatpush3.bf16.xpose.msra.mxu0 %v411_v33  ;;  %v1097_v33 = vld [vmem:[%s1506_s5 + $0x8] sm:$0xff]  }
  0x2b   :  { %1021 = vmatpush3.bf16.xpose.msra.mxu1 %v531_v34  ;;  %1028 = vmatprep.mubr.msk.bf16.mxu1 %vm1115_vm2, %v1114_v0  ;;  %v701_v34 = vsel %vm362_vm3, %v1097_v33, 0 }
  0x2c   :  { %1022 = vmatprep.subr.bf16.mxu1 %v1114_v0  ;;  %1010 = vmatprep.subr.bf16.mxu0 %v1114_v0 }
  0x2d   :  { %1016 = vmatprep.mubr.msk.bf16.mxu0 %vm1115_vm2, %v1114_v0 }
  0x32   :  { %1011 = vmatpush3.bf16.xpose.msra.mxu0 %v414_v37  ;;  %v1099_v37 = vld [vmem:[%s1506_s5 + $0x18] sm:$0xff]  }
  0x33   :  { %1023 = vmatpush3.bf16.xpose.msra.mxu1 %v534_v38  ;;  %1012 = vmatprep.subr.bf16.mxu0 %v1114_v0  ;;  %v707_v38 = vsel %vm362_vm3, %v1099_v37, 0  ;;  %v898_v37 = vld [vmem:[#allocation2] ss:$0 sm:$0xff] }
  0x34   :  { %1024 = vmatprep.subr.bf16.mxu1 %v1114_v0 }
  0x3a   :  { %1013 = vmatpush3.bf16.xpose.msra.mxu0 %v417_v41 }
  0x3b   :  { %1025 = vmatpush3.bf16.xpose.msra.mxu1 %v537_v42  ;;  %1014 = vmatprep.subr.bf16.mxu0 %v1114_v0 }
  0x3c   :  { %1026 = vmatprep.subr.bf16.mxu1 %v1114_v0 }
  0x42   :  { %1015 = vmatpush3.bf16.xpose.msra.mxu0 %v420_v63 }
  0x43   :  { %1027 = vmatpush3.bf16.xpose.msra.mxu1 %v540_v44  ;;  %1044 = vmatprep.subr.bf16.mxu0 %v1114_v0 }
  0x44   :  { %1032 = vmatprep.subr.bf16.mxu1 %v1114_v0 }
  0x4a   :  { %1029 = vmatmul.mubr.msk.bf16.vlgmr.msra.gmra.mrb[4].mxu1 %vm120_vm0, %v1272_v12 }
  0x4b   :  { %1033 = vmatpush3.bf16.xpose.msra.mxu1 %v604_v46  ;;  %1040 = vmatprep.mubr.msk.bf16.mxu1 %vm1115_vm2, %v1114_v0  ;;  %v1100_v46 = vld [vmem:[%s1510_s7] sm:$0xff]  }
  0x4c   :  { %1034 = vmatprep.subr.bf16.mxu1 %v1114_v0  ;;  %v809_v47 = vsel %vm362_vm3, %v1100_v46, 0 }
  0x53   :  { %1035 = vmatpush3.bf16.xpose.msra.mxu1 %v607_v48  ;;  %v1101_v48 = vld [vmem:[%s1510_s7 + $0x8] sm:$0xff]  }
  0x54   :  { %1036 = vmatprep.subr.bf16.mxu1 %v1114_v0  ;;  %v812_v49 = vsel %vm362_vm3, %v1101_v48, 0 }
  0x5b   :  { %1037 = vmatpush3.bf16.xpose.msra.mxu1 %v610_v50  ;;  %v1102_v50 = vld [vmem:[%s1510_s7 + $0x10] sm:$0xff]  }
  0x5c   :  { %1038 = vmatprep.subr.bf16.mxu1 %v1114_v0  ;;  %v815_v51 = vsel %vm362_vm3, %v1102_v50, 0 }
  0x63   :  { %1039 = vmatpush3.bf16.xpose.msra.mxu1 %v613_v52  ;;  %v1103_v52 = vld [vmem:[%s1510_s7 + $0x18] sm:$0xff]  }
  0x64   :  { %v818_v53 = vsel %vm362_vm3, %v1103_v52, 0 }
  0x6a   :  { %1041 = vmatmul.mubr.msk.bf16.vlgmr.msra.gmra.mrb[4].mxu1 %vm94_vm1, %v79_v32 }
  0xa1   :  { %v97_v33 = vpop.xlane.xlu0 %96 }
  0xa5   :  { %v100_v35 = vpop.xlane.xlu0 %99 }
  0xfc   :  { %v255_v8 = vpop.f32.mrb[0].mxu0 }
  0xfd   :  { %v331_v9 = vpop.f32.mrb[0].mxu1  ;;  %v994_v11 = vpop.f32.mrb[1].mxu0 }
  0xfe   :  { %v332_v12 = vadd.f32 %v331_v9, %v255_v8  ;;  %v1006_v13 = vpop.f32.mrb[1].mxu1  ;;  %v258_v14 = vpop.f32.mrb[2].mxu0  ;;  %v939_v8 = vld [vmem:[%s1514_s18] ss:$0 sm:$0xff] }
  0xff   :  { %v334_v15 = vpop.f32.mrb[2].mxu1  ;;  %v995_v16 = vpop.f32.mrb[3].mxu0 }
 0x100   :  { %v345_v17 = vadd.f32 %v913_v10, %v332_v12  ;;  %v335_v18 = vadd.f32 %v334_v15, %v258_v14  ;;  %v1007_v19 = vpop.f32.mrb[3].mxu1 }
 0x102   :  { %v349_v20 = vmul.f32 0.01, %v345_v17  ;;  %v346_v21 = vadd.f32 %v913_v10, %v335_v18  ;;  %vm347_vm4 = vcmp.ge.f32.partialorder %v345_v17, 0.0 }
 0x104   :  { %vm348_vm5 = vcmp.ge.f32.partialorder %v346_v21, 0.0  ;;  %v350_v24 = vmul.f32 0.01, %v346_v21  ;;  %v351_v25 = vsel %vm347_vm4, %v345_v17, %v349_v20 }
 0x105   :  { %v360_v26 = vmul.f32 %v914_v22, %v351_v25 }
 0x106   :  { %v352_v27 = vsel %vm348_vm5, %v346_v21, %v350_v24  ;;  %v940_v21 = vld [vmem:[%s1515_s8] ss:$0 sm:$0xff] }
 0x107   :  { %v363_v28 = vsel %vm362_vm3, %v360_v26, 0.0  ;;  %v371_v29 = vpack.c.bf16 %v352_v27, %v351_v25  ;;  %v361_v30 = vmul.f32 %v914_v22, %v352_v27 }
 0x108   :  { %364 = vadd.xlane.f32.xlu0 %v363_v28 }
 0x109   :  { %1017 = vmatmul.mubr.msk.bf16.vlgmr.msra.gmra.mrb[4].mxu0 %vm362_vm3, %v371_v29  ;;  %v366_v32 = vsel %vm362_vm3, %v361_v30, 0.0 }
 0x10a   :  { %367 = vadd.xlane.f32.xlu1 %v366_v32  ;;  %1045 = vmatpush3.bf16.xpose.msra.mxu0 %v698_v31 }
 0x10b   :  { %1046 = vmatprep.subr.bf16.mxu0 %v1114_v0  ;;  %1052 = vmatprep.mubr.msk.bf16.mxu0 %vm1115_vm2, %v1114_v0 }
 0x112   :  { %1047 = vmatpush3.bf16.xpose.msra.mxu0 %v701_v34  ;;  %v123_v34 = vpop.xlane.xlu1 %122 }
 0x113   :  { %1048 = vmatprep.subr.bf16.mxu0 %v1114_v0 }
 0x11a   :  { %1049 = vmatpush3.bf16.xpose.msra.mxu0 %v704_v36  ;;  %v126_v36 = vpop.xlane.xlu1 %125 }
 0x11b   :  { %1050 = vmatprep.subr.bf16.mxu0 %v1114_v0 }
 0x122   :  { %1051 = vmatpush3.bf16.xpose.msra.mxu0 %v707_v38  ;;  %v140_v38 = vpop.xlane.xlu0 %139 }
 0x123   :  { %1056 = vmatprep.subr.bf16.mxu0 %v1114_v0 }
 0x13d   :  { %v649_v39 = vpop.f32.mrb[4].mxu1 }
 0x13e   :  { %v1042_v40 = vpop.f32.mrb[5].mxu1  ;;  %v656_v42 = vmul.f32 %v649_v39, %v649_v39 }
 0x13f   :  { %v652_v41 = vpop.f32.mrb[6].mxu1  ;;  %v107_v40 = vadd.f32 %v898_v37, %v97_v33 }
 0x140   :  { %v657_v43 = vmul.f32 %v652_v41, %v652_v41  ;;  %v1043_v44 = vpop.f32.mrb[7].mxu1 }
 0x142   :  { %v658_v45 = vpack.c.bf16 %v657_v43, %v656_v42  ;;  %v159_v42 = vpop.xlane.xlu0 %158  ;;  %v127_v43 = vadd.f32 %v123_v34, %v107_v40 }
 0x144   :  { %1053 = vmatmul.mubr.msk.bf16.vlgmr.msra.gmra.mrb[8].mxu0 %vm362_vm3, %v658_v45  ;;  %v144_v46 = vadd.f32 %v140_v38, %v127_v43 }
 0x145   :  { %1064 = vmatprep.mubr.msk.bf16.mxu0 %vm1115_vm2, %v1114_v0  ;;  %1057 = vmatpush3.bf16.xpose.msra.mxu0 %v809_v47 }
 0x146   :  { %1058 = vmatprep.subr.bf16.mxu0 %v1114_v0  ;;  %v163_v50 = vadd.f32 %v159_v42, %v144_v46 }
 0x14d   :  { %1059 = vmatpush3.bf16.xpose.msra.mxu0 %v812_v49 }
 0x14e   :  { %1060 = vmatprep.subr.bf16.mxu0 %v1114_v0 }
 0x155   :  { %1061 = vmatpush3.bf16.xpose.msra.mxu0 %v815_v51 }
 0x156   :  { %1062 = vmatprep.subr.bf16.mxu0 %v1114_v0  ;;  %v921_v0 = vld [vmem:[%s1512_s21] ss:$0 sm:$0xff] }
 0x15d   :  { %1063 = vmatpush3.bf16.xpose.msra.mxu0 %v818_v53 }
 0x195   :  { %v365_v47 = vpop.xlane.xlu0 %364 }
 0x1dc   :  { %v456_v55 = vpop.f32.mrb[4].mxu0 }
 0x1dd   :  { %v457_v56 = vadd.f32 %v915_v54, %v456_v55  ;;  %v1018_v57 = vpop.f32.mrb[5].mxu0 }
 0x1de   :  { %v459_v58 = vpop.f32.mrb[6].mxu0 }
 0x1df   :  { %vm463_vm6 = vcmp.ge.f32.partialorder %v457_v56, 0.0  ;;  %v465_v59 = vmul.f32 0.01, %v457_v56  ;;  %v460_v60 = vadd.f32 %v915_v54, %v459_v58  ;;  %v1019_v61 = vpop.f32.mrb[7].mxu0  ;;  %v369_v54 = vadd.f32 %v365_v47, %v163_v50 }
 0x1e1   :  { %vm464_vm7 = vcmp.ge.f32.partialorder %v460_v60, 0.0  ;;  %v466_v62 = vmul.f32 0.01, %v460_v60  ;;  %v467_v63 = vsel %vm463_vm6, %v457_v56, %v465_v59 }
 0x1e2   :  { %v476_v1 = vmul.f32 %v921_v0, %v467_v63 }
 0x1e3   :  { %v468_v2 = vsel %vm464_vm7, %v460_v60, %v466_v62 }
 0x1e4   :  { %v478_v3 = vsel %vm362_vm3, %v476_v1, 0.0  ;;  %v477_v4 = vmul.f32 %v921_v0, %v468_v2 }
 0x1e5   :  { %479 = vadd.xlane.f32.xlu0 %v478_v3 }
 0x1e6   :  { %v481_v5 = vsel %vm362_vm3, %v477_v4, 0.0 }
 0x1e7   :  { %482 = vadd.xlane.f32.xlu1 %v481_v5 }
 0x217   :  { %v743_v7 = vpop.f32.mrb[8].mxu0 }
 0x218   :  { %v744_v9 = vadd.f32 %v933_v6, %v743_v7  ;;  %v1054_v10 = vpop.f32.mrb[9].mxu0 }
 0x219   :  { %v746_v11 = vpop.f32.mrb[10].mxu0 }
 0x21a   :  { %v767_v12 = vmul.f32 %v744_v9, %v649_v39  ;;  %v747_v13 = vadd.f32 %v933_v6, %v746_v11  ;;  %v1055_v14 = vpop.f32.mrb[11].mxu0  ;;  %v757_v15 = vmul.f32 %v939_v8, %v744_v9  ;;  %v143_v39 = vpop.xlane.xlu1 %142 }
 0x21c   :  { %v768_v16 = vmul.f32 %v747_v13, %v652_v41  ;;  %v759_v17 = vsel %vm362_vm3, %v757_v15, 0.0  ;;  %v758_v18 = vmul.f32 %v939_v8, %v747_v13  ;;  %v108_v41 = vadd.f32 %v898_v37, %v100_v35 }
 0x21d   :  { %760 = vadd.xlane.f32.xlu0 %v759_v17 }
 0x21e   :  { %v769_v19 = vpack.c.bf16 %v768_v16, %v767_v12  ;;  %v762_v20 = vsel %vm362_vm3, %v758_v18, 0.0  ;;  %v162_v44 = vpop.xlane.xlu1 %161  ;;  %v128_v45 = vadd.f32 %v126_v36, %v108_v41 }
 0x21f   :  { %763 = vadd.xlane.f32.xlu1 %v762_v20 }
 0x220   :  { %1065 = vmatmul.mubr.msk.bf16.vlgmr.msra.gmra.mrb[12].mxu0 %vm362_vm3, %v769_v19  ;;  %v145_v48 = vadd.f32 %v143_v39, %v128_v45 }
 0x222   :  { %v368_v49 = vpop.xlane.xlu1 %367  ;;  %v164_v52 = vadd.f32 %v162_v44, %v145_v48 }
 0x224   :  { %v370_v56 = vadd.f32 %v368_v49, %v164_v52 }
 0x272   :  { %v480_v51 = vpop.xlane.xlu0 %479 }
 0x273   :  { %v484_v57 = vadd.f32 %v480_v51, %v369_v54 }
 0x274   :  { %v483_v53 = vpop.xlane.xlu1 %482 }
 0x275   :  { %v485_v59 = vadd.f32 %v483_v53, %v370_v56 }
 0x2aa   :  { %v761_v55 = vpop.xlane.xlu0 %760 }
 0x2ab   :  { %v765_v60 = vadd.f32 %v761_v55, %v484_v57 }
 0x2ac   :  { %v764_v58 = vpop.xlane.xlu1 %763 }
 0x2ad   :  { %v766_v0 = vadd.f32 %v764_v58, %v485_v59 }
 0x2f3   :  { %v854_v22 = vpop.f32.mrb[12].mxu0 }
 0x2f4   :  { %v855_v24 = vadd.f32 %v940_v21, %v854_v22  ;;  %v1066_v25 = vpop.f32.mrb[13].mxu0 }
 0x2f5   :  { %v857_v26 = vpop.f32.mrb[14].mxu0 }
 0x2f6   :  { %v858_v27 = vadd.f32 %v940_v21, %v857_v26  ;;  %v1067_v28 = vpop.f32.mrb[15].mxu0  ;;  %v868_v29 = vmul.f32 %v946_v23, %v855_v24 }
 0x2f8   :  { %v870_v30 = vsel %vm362_vm3, %v868_v29, 0.0  ;;  %v869_v31 = vmul.f32 %v946_v23, %v858_v27 }
 0x2f9   :  { %871 = vadd.xlane.f32.xlu0 %v870_v30 }
 0x2fa   :  { %v873_v32 = vsel %vm362_vm3, %v869_v31, 0.0 }
 0x2fb   :  { %874 = vadd.xlane.f32.xlu1 %v873_v32 }
 0x386   :  { %v872_v61 = vpop.xlane.xlu0 %871 }
 0x387   :  { %v876_v62 = vadd.f32 %v872_v61, %v765_v60 }
 0x388   :  { %v875_v63 = vpop.xlane.xlu1 %874 }
 0x389   :  { %v947_v1 = vmul.f32 -1.442695, %v876_v62  ;;  %v877_v2 = vadd.f32 %v875_v63, %v766_v0 }
 0x38b   :  { %1106 = vpow2.f32 %v947_v1  ;;  %v948_v3 = vmul.f32 -1.442695, %v877_v2 }
 0x38d   :  { %1108 = vpow2.f32 %v948_v3 }
 0x395   :  { %v1107_v4 = vpop.eup %1106 }
 0x396   :  { %v884_v5 = vadd.f32 1.0, %v1107_v4 }
 0x397   :  { %v1109_v6 = vpop.eup %1108 }
 0x398   :  { %1110 = vrcp.f32 %v884_v5  ;;  %v885_v7 = vadd.f32 1.0, %v1109_v6 }
 0x39a   :  { %1112 = vrcp.f32 %v885_v7 }
 0x3a2   :  { %v1111_v8 = vpop.eup %1110 }
 0x3a3   :  { %891 = vst.msk [vmem:[%s1517_s23] sm:$0xff] %vm890_vm8, %v1111_v8 }
 0x3a4   :  { %v1113_v9 = vpop.eup %1112 }
 0x3a5   :  { %892 = vst.msk [vmem:[%s1517_s23 + $0x8] sm:$0xff] %vm890_vm8, %v1113_v9 }

</bundles_post_ra>
